<compile_context>
chip_gen: v7x
topology: tpu7x:2x2x1
jax: 0.10.0
libtpu: 0.0.40
codegen_flags: <defaults>
</compile_context>

<pallas_src>
import functools

import jax
import jax.numpy as jnp
from jax.experimental import pallas as pl
from jax.experimental.pallas import tpu as pltpu


def _round_up(v, m):
    return ((v + m - 1) // m) * m


# --------------------------------------------------------------------------- #
# Pallas kernel: one (TM, TN) output tile of  act(A @ B + bias), reduced over  #
# K tiles.  o_ref (f32) is the accumulator (K-invariant block index).          #
# --------------------------------------------------------------------------- #
def _propagate_kernel(a_ref, b_ref, bias_ref, o_ref, *, apply_relu, tile_k,
                      b_resident):
    k = pl.program_id(2)

    @pl.when(k == 0)
    def _():
        o_ref[...] = jnp.broadcast_to(bias_ref[...], o_ref.shape)

    if b_resident:
        # b_ref is the full (K, TN) column slab resident in VMEM.
        k_start = pl.multiple_of(k * tile_k, tile_k)
        b_tile = b_ref[pl.ds(k_start, tile_k), :]
    else:
        # b_ref is a streamed (tile_k, TN) block.
        b_tile = b_ref[...]

    o_ref[...] += jnp.dot(a_ref[...], b_tile,
                          preferred_element_type=jnp.float32)

    if apply_relu:
        @pl.when(k == pl.num_programs(2) - 1)
        def _():
            o_ref[...] = jnp.maximum(o_ref[...], 0.0)


def _gcn_propagate(a, b, bias, *, apply_relu, tile_m, tile_k):
    """act(A @ B + bias).  A:(M,K) bf16, B:(K,C) bf16, bias:(1,C) f32.

    M, K are multiples of tile_m/tile_k; C is a multiple of 128.
    """
    m, k_dim = a.shape
    _, c = b.shape

    # One j block when the feature width is modest (<=512): A is then streamed
    # from HBM exactly once per pass.  Wider outputs fall back to 128 columns.
    tile_n = c if c <= 512 else 128

    # Keep the resident B slab only while it fits comfortably in VMEM
    # (double-buffered) -- relevant for very large graphs.
    b_resident = (k_dim * tile_n * 2) <= 8 * 1024 * 1024
    if b_resident:
        b_spec = pl.BlockSpec((k_dim, tile_n), lambda j, i, k: (0, j))
    else:
        b_spec = pl.BlockSpec((tile_k, tile_n), lambda j, i, k: (k, j))

    grid = (c // tile_n, m // tile_m, k_dim // tile_k)   # (j, i, k), k last

    cost = pl.CostEstimate(
        flops=2 * m * k_dim * c,
        transcendentals=0,
        bytes_accessed=m * k_dim * 2 + k_dim * c * 2 + c * 4 + m * c * 4,
    )

    kernel = functools.partial(_propagate_kernel, apply_relu=apply_relu,
                               tile_k=tile_k, b_resident=b_resident)
    return pl.pallas_call(
        kernel,
        out_shape=jax.ShapeDtypeStruct((m, c), jnp.float32),
        grid_spec=pltpu.PrefetchScalarGridSpec(
            num_scalar_prefetch=0,
            grid=grid,
            in_specs=[
                pl.BlockSpec((tile_m, tile_k), lambda j, i, k: (i, k)),  # A tile
                b_spec,                                                  # B
                pl.BlockSpec((1, tile_n), lambda j, i, k: (0, j)),       # bias
            ],
            out_specs=pl.BlockSpec((tile_m, tile_n), lambda j, i, k: (i, j)),
        ),
        compiler_params=pltpu.CompilerParams(
            dimension_semantics=("parallel", "parallel", "arbitrary"),
            vmem_limit_bytes=48 * 1024 * 1024),
        cost_estimate=cost,
    )(a, b, bias)


# --------------------------------------------------------------------------- #
# Plain-JAX glue: dense symmetric-normalized adjacency (PyG gcn_norm), padded  #
# --------------------------------------------------------------------------- #
def gcn_normalized_adjacency_padded(edge_index, num_nodes, n_pad):
    """Pre-padded dense D^{-1/2}(A+I)D^{-1/2}, A[dst, src] = 1 (self loops)."""
    src, dst = edge_index[0], edge_index[1]
    loop = jnp.arange(num_nodes, dtype=edge_index.dtype)
    src = jnp.concatenate([src, loop])
    dst = jnp.concatenate([dst, loop])
    w = jnp.ones(src.shape[0], dtype=jnp.float32)
    deg = jnp.zeros((num_nodes,), jnp.float32).at[dst].add(w)
    dinv = jnp.where(deg > 0, jax.lax.rsqrt(deg), 0.0)
    norm = dinv[src] * w * dinv[dst]
    # Scatter straight into the padded buffer (all indices < num_nodes land in
    # the top-left block), then a single cast to bf16: no extra O(N^2) pad passes.
    a = jnp.zeros((n_pad, n_pad), jnp.float32).at[dst, src].add(norm)
    return a.astype(jnp.bfloat16)


# --------------------------------------------------------------------------- #
# Full encoder forward                                                         #
# --------------------------------------------------------------------------- #
def variational_gcn_encoder(x, edge_index, params, *, a_tile=512, feat_tile=128):
    """x: (N, in_channels) f32, edge_index: (2, E) int32 -> (mu, logstd)."""
    n, _ = x.shape
    hidden = params["w1"].shape[1]
    out_channels = params["wmu"].shape[1]

    n_pad = _round_up(n, a_tile)           # NOTE(v7x): pick a_tile so n_pad/a_tile
    hid_pad = _round_up(hidden, feat_tile)  # is >=2 (ideally even) for both TCs.
    out2_pad = _round_up(2 * out_channels, feat_tile)

    a_pad = gcn_normalized_adjacency_padded(edge_index, n, n_pad)

    # Pad the tiny weights/biases and the node features once (O(N*C), off the
    # dominant A-propagation path).
    x_pad = jnp.pad(x, ((0, n_pad - n), (0, 0)))
    w1 = jnp.pad(params["w1"], ((0, 0), (0, hid_pad - hidden)))
    b1 = jnp.pad(params["b1"], ((0, 0), (0, hid_pad - hidden)))

    # ---- conv1: h = relu(A_hat @ (x @ W1) + b1) -------------------------------
    xw1 = jnp.dot(x_pad, w1).astype(jnp.bfloat16)        # cheap O(N*C^2) in XLA
    h = _gcn_propagate(a_pad, xw1, b1, apply_relu=True,
                       tile_m=a_tile, tile_k=a_tile)
    # Invariant: rows n..n_pad of h hold relu(b1) (A's padded rows are zero);
    # harmless because A's padded *columns* are zero in the next propagation.
    # Padded feature columns of h are exactly zero (zero-padded W1/b1).

    # ---- fused conv_mu / conv_logstd: [mu|ls] = A_hat @ (h @ [Wmu|Wls]) + b2 --
    w2 = jnp.concatenate([params["wmu"], params["wls"]], axis=1)
    b2 = jnp.concatenate([params["bmu"], params["bls"]], axis=1)
    w2 = jnp.pad(w2, ((0, hid_pad - hidden), (0, out2_pad - 2 * out_channels)))
    b2 = jnp.pad(b2, ((0, 0), (0, out2_pad - 2 * out_channels)))
    hw2 = jnp.dot(h, w2).astype(jnp.bfloat16)            # cheap O(N*C^2) in XLA
    out_pad = _gcn_propagate(a_pad, hw2, b2, apply_relu=False,
                             tile_m=a_tile, tile_k=a_tile)

    mu = out_pad[:n, :out_channels]
    logstd = out_pad[:n, out_channels:2 * out_channels]
    return mu, logstd


def reference_encoder(x, edge_index, params):
    n = x.shape[0]
    a = gcn_normalized_adjacency_padded(edge_index, n, n).astype(jnp.float32)
    h = jnp.maximum(a @ (x @ params["w1"]) + params["b1"], 0.0)
    mu = a @ (h @ params["wmu"]) + params["bmu"]
    ls = a @ (h @ params["wls"]) + params["bls"]
    return mu, ls


def init_params(key, in_channels, out_channels):
    hidden = 2 * out_channels
    k1, k2, k3 = jax.random.split(key, 3)

    def glorot(k, fan_in, fan_out):
        lim = (6.0 / (fan_in + fan_out)) ** 0.5
        return jax.random.uniform(k, (fan_in, fan_out), jnp.float32, -lim, lim)

    return {
        "w1": glorot(k1, in_channels, hidden),
        "b1": jnp.zeros((1, hidden), jnp.float32),
        "wmu": glorot(k2, hidden, out_channels),
        "bmu": jnp.zeros((1, out_channels), jnp.float32),
        "wls": glorot(k3, hidden, out_channels),
        "bls": jnp.zeros((1, out_channels), jnp.float32),
    }


if __name__ == "__main__":
    key = jax.random.PRNGKey(0)
    kx, kp = jax.random.split(key)

    num_nodes = 16
    in_channels = 8
    out_channels = 4

    x = jax.random.normal(kx, (num_nodes, in_channels), jnp.float32)

    # Deterministic small graph: bidirectional ring
    src = jnp.arange(num_nodes, dtype=jnp.int32)
    dst = (src + 1) % num_nodes
    edge_index = jnp.stack([jnp.concatenate([src, dst]),
                            jnp.concatenate([dst, src])], axis=0)

    params = init_params(kp, in_channels, out_channels)

    mu, logstd = jax.jit(variational_gcn_encoder)(x, edge_index, params)
    jax.block_until_ready((mu, logstd))

    assert mu.shape == (num_nodes, out_channels)
    assert logstd.shape == (num_nodes, out_channels)

    # Loose check vs f32 plain-JAX reference (kernel uses bf16 A / RHS, f32 accum).
    mu_ref, ls_ref = reference_encoder(x, edge_index, params)
    assert jnp.allclose(mu, mu_ref, atol=5e-2, rtol=5e-2)
    assert jnp.allclose(logstd, ls_ref, atol=5e-2, rtol=5e-2)

    print("KERNEL_OK")
</pallas_src>

<mosaic_0001>
module attributes {stable_mosaic.version = 11 : i64} {
  func.func private @main(%arg0: i32) attributes {dimension_semantics = [#tpu.dimension_semantics<core_parallel>], iteration_bounds = array<i64: 2>, tpu.core_type = #tpu.core_type<sc_scalar_subcore>, window_params = []} {
    return
  }
}

module attributes {stable_mosaic.version = 11 : i64} {
  func.func private @main(%arg0: i32) attributes {dimension_semantics = [#tpu.dimension_semantics<core_parallel>], iteration_bounds = array<i64: 2>, tpu.core_type = #tpu.core_type<sc_scalar_subcore>, window_params = []} {
    return
  }
}

module attributes {stable_mosaic.version = 11 : i64} {
  func.func @_propagate_kernel(%arg0: i32, %arg1: i32, %arg2: i32, %arg3: memref<512x512xbf16, #tpu.memory_space<vmem>>, %arg4: memref<512x128xbf16, #tpu.memory_space<vmem>>, %arg5: memref<1x128xf32, #tpu.memory_space<vmem>>, %arg6: memref<512x128xf32, #tpu.memory_space<vmem>>) attributes {dimension_semantics = [#tpu.dimension_semantics<parallel>, #tpu.dimension_semantics<parallel>, #tpu.dimension_semantics<arbitrary>], iteration_bounds = array<i64: 1, 1, 1>, scalar_prefetch = 0 : i64, scratch_operands = 0 : i64, tpu.core_type = #tpu.core_type<tc>, window_params = [{transform_indices = @transform_0, window_bounds = array<i64: 512, 512>}, {transform_indices = @transform_1, window_bounds = array<i64: 512, 128>}, {transform_indices = @transform_2, window_bounds = array<i64: 1, 128>}, {transform_indices = @transform_3, window_bounds = array<i64: 512, 128>}]} {
    %c0_i32 = arith.constant 0 : i32
    %0 = arith.cmpi eq, %arg2, %c0_i32 : i32
    %1 = arith.extui %0 : i1 to i32
    %c0_i32_0 = arith.constant 0 : i32
    %2 = arith.cmpi ne, %1, %c0_i32_0 : i32
    scf.if %2 {
      %c0_9 = arith.constant 0 : index
      %c0_10 = arith.constant 0 : index
      %15 = vector.load %arg5[%c0_9, %c0_10] : memref<1x128xf32, #tpu.memory_space<vmem>>, vector<1x128xf32>
      %16 = vector.shape_cast %15 : vector<1x128xf32> to vector<1x128xf32>
      %17 = vector.broadcast %16 : vector<1x128xf32> to vector<512x128xf32>
      %c0_11 = arith.constant 0 : index
      %c0_12 = arith.constant 0 : index
      %18 = vector.load %arg6[%c0_11, %c0_12] : memref<512x128xf32, #tpu.memory_space<vmem>>, vector<512x128xf32>
      tpu.vector_store %arg6[%c0_11, %c0_12], %17 {strides = array<i32>} : memref<512x128xf32, #tpu.memory_space<vmem>>, vector<512x128xf32>,
    } else {
    }
    %c512_i32 = arith.constant 512 : i32
    %3 = arith.muli %arg2, %c512_i32 : i32
    %4 = tpu.assume_multiple %3, 512 : i32
    %5 = arith.index_cast %4 : i32 to index
    %c0 = arith.constant 0 : index
    %6 = vector.load %arg4[%5, %c0] : memref<512x128xbf16, #tpu.memory_space<vmem>>, vector<512x128xbf16>
    %c0_1 = arith.constant 0 : index
    %c0_2 = arith.constant 0 : index
    %7 = vector.load %arg6[%c0_1, %c0_2] : memref<512x128xf32, #tpu.memory_space<vmem>>, vector<512x128xf32>
    %c0_3 = arith.constant 0 : index
    %c0_4 = arith.constant 0 : index
    %8 = vector.load %arg3[%c0_3, %c0_4] : memref<512x512xbf16, #tpu.memory_space<vmem>>, vector<512x512xbf16>
    %cst = arith.constant dense<0.000000e+00> : vector<512x128xf32>
    %9 = tpu.matmul %8, %6, %cst {dimension_numbers = #tpu.dot_dimension_numbers<[1], [0], [0], [1], [0, 0, 1, 1], [], []>} : vector<512x512xbf16>, vector<512x128xbf16>, vector<512x128xf32> -> vector<512x128xf32>
    %10 = arith.addf %7, %9 : vector<512x128xf32>
    %c0_5 = arith.constant 0 : index
    %c0_6 = arith.constant 0 : index
    %11 = vector.load %arg6[%c0_5, %c0_6] : memref<512x128xf32, #tpu.memory_space<vmem>>, vector<512x128xf32>
    tpu.vector_store %arg6[%c0_5, %c0_6], %10 {strides = array<i32>} : memref<512x128xf32, #tpu.memory_space<vmem>>, vector<512x128xf32>,
    %c0_i32_7 = arith.constant 0 : i32
    %12 = arith.cmpi eq, %arg2, %c0_i32_7 : i32
    %13 = arith.extui %12 : i1 to i32
    %c0_i32_8 = arith.constant 0 : i32
    %14 = arith.cmpi ne, %13, %c0_i32_8 : i32
    scf.if %14 {
      %c0_9 = arith.constant 0 : index
      %c0_10 = arith.constant 0 : index
      %15 = vector.load %arg6[%c0_9, %c0_10] : memref<512x128xf32, #tpu.memory_space<vmem>>, vector<512x128xf32>
      %cst_11 = arith.constant 0.000000e+00 : f32
      %16 = vector.broadcast %cst_11 : f32 to vector<512x128xf32>
      %17 = arith.maximumf %15, %16 : vector<512x128xf32>
      %c0_12 = arith.constant 0 : index
      %c0_13 = arith.constant 0 : index
      %18 = vector.load %arg6[%c0_12, %c0_13] : memref<512x128xf32, #tpu.memory_space<vmem>>, vector<512x128xf32>
      tpu.vector_store %arg6[%c0_12, %c0_13], %17 {strides = array<i32>} : memref<512x128xf32, #tpu.memory_space<vmem>>, vector<512x128xf32>,
    } else {
    }
    return
  }
  func.func @transform_0(%arg0: i32, %arg1: i32, %arg2: i32) -> (i32, i32) {
    %c0_i32 = arith.constant 0 : i32
    return %arg1, %arg2 : i32, i32
  }
  func.func @transform_1(%arg0: i32, %arg1: i32, %arg2: i32) -> (i32, i32) {
    %c0_i32 = arith.constant 0 : i32
    %c0_i32_0 = arith.constant 0 : i32
    return %c0_i32, %arg0 : i32, i32
  }
  func.func @transform_2(%arg0: i32, %arg1: i32, %arg2: i32) -> (i32, i32) {
    %c0_i32 = arith.constant 0 : i32
    %c0_i32_0 = arith.constant 0 : i32
    return %c0_i32, %arg0 : i32, i32
  }
  func.func @transform_3(%arg0: i32, %arg1: i32, %arg2: i32) -> (i32, i32) {
    %c0_i32 = arith.constant 0 : i32
    return %arg1, %arg0 : i32, i32
  }
}

module attributes {stable_mosaic.version = 11 : i64} {
  func.func @_propagate_kernel(%arg0: i32, %arg1: i32, %arg2: i32, %arg3: memref<512x512xbf16, #tpu.memory_space<vmem>>, %arg4: memref<512x128xbf16, #tpu.memory_space<vmem>>, %arg5: memref<1x128xf32, #tpu.memory_space<vmem>>, %arg6: memref<512x128xf32, #tpu.memory_space<vmem>>) attributes {dimension_semantics = [#tpu.dimension_semantics<parallel>, #tpu.dimension_semantics<parallel>, #tpu.dimension_semantics<arbitrary>], iteration_bounds = array<i64: 1, 1, 1>, scalar_prefetch = 0 : i64, scratch_operands = 0 : i64, tpu.core_type = #tpu.core_type<tc>, window_params = [{transform_indices = @transform_0, window_bounds = array<i64: 512, 512>}, {transform_indices = @transform_1, window_bounds = array<i64: 512, 128>}, {transform_indices = @transform_2, window_bounds = array<i64: 1, 128>}, {transform_indices = @transform_3, window_bounds = array<i64: 512, 128>}]} {
    %c0_i32 = arith.constant 0 : i32
    %0 = arith.cmpi eq, %arg2, %c0_i32 : i32
    %1 = arith.extui %0 : i1 to i32
    %c0_i32_0 = arith.constant 0 : i32
    %2 = arith.cmpi ne, %1, %c0_i32_0 : i32
    scf.if %2 {
      %c0_7 = arith.constant 0 : index
      %c0_8 = arith.constant 0 : index
      %12 = vector.load %arg5[%c0_7, %c0_8] : memref<1x128xf32, #tpu.memory_space<vmem>>, vector<1x128xf32>
      %13 = vector.shape_cast %12 : vector<1x128xf32> to vector<1x128xf32>
      %14 = vector.broadcast %13 : vector<1x128xf32> to vector<512x128xf32>
      %c0_9 = arith.constant 0 : index
      %c0_10 = arith.constant 0 : index
      %15 = vector.load %arg6[%c0_9, %c0_10] : memref<512x128xf32, #tpu.memory_space<vmem>>, vector<512x128xf32>
      tpu.vector_store %arg6[%c0_9, %c0_10], %14 {strides = array<i32>} : memref<512x128xf32, #tpu.memory_space<vmem>>, vector<512x128xf32>,
    } else {
    }
    %c512_i32 = arith.constant 512 : i32
    %3 = arith.muli %arg2, %c512_i32 : i32
    %4 = tpu.assume_multiple %3, 512 : i32
    %5 = arith.index_cast %4 : i32 to index
    %c0 = arith.constant 0 : index
    %6 = vector.load %arg4[%5, %c0] : memref<512x128xbf16, #tpu.memory_space<vmem>>, vector<512x128xbf16>
    %c0_1 = arith.constant 0 : index
    %c0_2 = arith.constant 0 : index
    %7 = vector.load %arg6[%c0_1, %c0_2] : memref<512x128xf32, #tpu.memory_space<vmem>>, vector<512x128xf32>
    %c0_3 = arith.constant 0 : index
    %c0_4 = arith.constant 0 : index
    %8 = vector.load %arg3[%c0_3, %c0_4] : memref<512x512xbf16, #tpu.memory_space<vmem>>, vector<512x512xbf16>
    %cst = arith.constant dense<0.000000e+00> : vector<512x128xf32>
    %9 = tpu.matmul %8, %6, %cst {dimension_numbers = #tpu.dot_dimension_numbers<[1], [0], [0], [1], [0, 0, 1, 1], [], []>} : vector<512x512xbf16>, vector<512x128xbf16>, vector<512x128xf32> -> vector<512x128xf32>
    %10 = arith.addf %7, %9 : vector<512x128xf32>
    %c0_5 = arith.constant 0 : index
    %c0_6 = arith.constant 0 : index
    %11 = vector.load %arg6[%c0_5, %c0_6] : memref<512x128xf32, #tpu.memory_space<vmem>>, vector<512x128xf32>
    tpu.vector_store %arg6[%c0_5, %c0_6], %10 {strides = array<i32>} : memref<512x128xf32, #tpu.memory_space<vmem>>, vector<512x128xf32>,
    return
  }
  func.func @transform_0(%arg0: i32, %arg1: i32, %arg2: i32) -> (i32, i32) {
    %c0_i32 = arith.constant 0 : i32
    return %arg1, %arg2 : i32, i32
  }
  func.func @transform_1(%arg0: i32, %arg1: i32, %arg2: i32) -> (i32, i32) {
    %c0_i32 = arith.constant 0 : i32
    %c0_i32_0 = arith.constant 0 : i32
    return %c0_i32, %arg0 : i32, i32
  }
  func.func @transform_2(%arg0: i32, %arg1: i32, %arg2: i32) -> (i32, i32) {
    %c0_i32 = arith.constant 0 : i32
    %c0_i32_0 = arith.constant 0 : i32
    return %c0_i32, %arg0 : i32, i32
  }
  func.func @transform_3(%arg0: i32, %arg1: i32, %arg2: i32) -> (i32, i32) {
    %c0_i32 = arith.constant 0 : i32
    return %arg1, %arg0 : i32, i32
  }
}

</mosaic_0001>

<bundles_post_ra>
// kernel: mul.1
= control target key start
LH: loop header
LB: loop body
LE: loop exit
PB: predicated region body
PF: predicated region fallthrough
CT: control target
= control target key end

     0   :  { %s34_s0 = inlined_call_operand.vmem [shape: f32[48], index: 0, kind: input, shape index: {}]   ;;  %s35_s1 = inlined_call_operand.vmem [shape: f32[48], index: 1, kind: input, shape index: {}]   ;;  %s36_s2 = inlined_call_operand.vmem [shape: f32[48], index: 2, kind: output, shape index: {}]  }
   0x1   :  { %v3_v0 = vld [vmem:[%s34_s0] sm:$0x1] }
   0x2   :  { %v4_v1 = vld [vmem:[%s35_s1] sm:$0x1] }
   0x3   :  { %v7_v2 = vmul.f32 %v4_v1, %v3_v0 }
   0x5   :  { %9 = vst [vmem:[%s36_s2] sm:$0x1] %v7_v2 }

// kernel: variational_gcn_encoder.3
= control target key start
LH: loop header
LB: loop body
LE: loop exit
PB: predicated region body
PF: predicated region fallthrough
CT: control target
= control target key end

     0   :  { %v2282_v0 = vmov 0   ;;  %s3112_s1 = inlined_call_operand.vmem [shape: bf16[512,128], index: 1, kind: input, shape index: {}]   ;;  %s3113_s0 = inlined_call_operand.vmem [shape: bf16[512,512], index: 0, kind: input, shape index: {}]   ;;  %s3114_s2 = inlined_call_operand.vmem [shape: f32[1,128], index: 2, kind: input, shape index: {}]   ;;  %s3115_s3 = inlined_call_operand.vmem [shape: f32[512,128], index: 3, kind: output, shape index: {}]  }
   0x1   :  { %1183 = vmatprep.subr.bf16.mxu0 %v2282_v0  ;;  %1472 = vmatprep.subr.bf16.mxu1 %v2282_v0  ;;  %v2057_v1 = vld [vmem:[%s3112_s1] sm:$0xff]   ;;  %v2059_v3 = vld [vmem:[%s3112_s1 + $0x8] sm:$0xff]   ;;  %v2061_v5 = vld [vmem:[%s3112_s1 + $0x10] sm:$0xff]  }
   0x2   :  { %v2058_v2 = vld [vmem:[%s3112_s1 + $0x80] sm:$0xff]   ;;  %1184 = vmatpush1.bf16.msra.mxu0 %v2057_v1  ;;  %v2060_v4 = vld [vmem:[%s3112_s1 + $0x88] sm:$0xff]   ;;  %v2062_v6 = vld [vmem:[%s3112_s1 + $0x90] sm:$0xff]  }
   0x3   :  { %1473 = vmatpush1.bf16.msra.mxu1 %v2058_v2  ;;  %1185 = vmatprep.subr.bf16.mxu0 %v2282_v0  ;;  %v2063_v7 = vld [vmem:[%s3112_s1 + $0x18] sm:$0xff]   ;;  %v2065_v9 = vld [vmem:[%s3112_s1 + $0x20] sm:$0xff]   ;;  %v2067_v11 = vld [vmem:[%s3112_s1 + $0x28] sm:$0xff]  }
   0x4   :  { %1474 = vmatprep.subr.bf16.mxu1 %v2282_v0  ;;  %v2064_v8 = vld [vmem:[%s3112_s1 + $0x98] sm:$0xff]   ;;  %v2066_v10 = vld [vmem:[%s3112_s1 + $0xa0] sm:$0xff]   ;;  %v2068_v12 = vld [vmem:[%s3112_s1 + $0xa8] sm:$0xff]  }
   0x5   :  { %v2069_v13 = vld [vmem:[%s3112_s1 + $0x30] sm:$0xff]   ;;  %v2071_v15 = vld [vmem:[%s3112_s1 + $0x38] sm:$0xff]   ;;  %v2073_v17 = vld [vmem:[%s3112_s1 + $0x40] sm:$0xff]  }
   0x6   :  { %1186 = vmatpush1.bf16.msra.mxu0 %v2059_v3  ;;  %v2070_v14 = vld [vmem:[%s3112_s1 + $0xb0] sm:$0xff]   ;;  %v2072_v16 = vld [vmem:[%s3112_s1 + $0xb8] sm:$0xff]   ;;  %v2074_v18 = vld [vmem:[%s3112_s1 + $0xc0] sm:$0xff]  }
   0x7   :  { %1475 = vmatpush1.bf16.msra.mxu1 %v2060_v4  ;;  %1187 = vmatprep.subr.bf16.mxu0 %v2282_v0  ;;  %v2091_v19 = vld [vmem:[%s3113_s0 + $0x4] ss:$16 sps:$4 sm:$0xff]   ;;  %v2075_v20 = vld [vmem:[%s3112_s1 + $0x48] sm:$0xff]   ;;  %v2079_v25 = vld [vmem:[%s3112_s1 + $0x58] sm:$0xff]  }
   0x8   :  { %1476 = vmatprep.subr.bf16.mxu1 %v2282_v0  ;;  %v2094_v21 = vld [vmem:[%s3113_s0 + $0xc] ss:$16 sps:$4 sm:$0xff]   ;;  %1215 = vmatprep.mubr.bf16.mxu0 %v2091_v19  ;;  %v2077_v23 = vld [vmem:[%s3112_s1 + $0x50] sm:$0xff]   ;;  %v2081_v27 = vld [vmem:[%s3112_s1 + $0x60] sm:$0xff]  }
   0x9   :  { %v2076_v22 = vld [vmem:[%s3112_s1 + $0xc8] sm:$0xff]   ;;  %1504 = vmatprep.mubr.bf16.mxu1 %v2094_v21  ;;  %v2078_v24 = vld [vmem:[%s3112_s1 + $0xd0] sm:$0xff]   ;;  %v2080_v26 = vld [vmem:[%s3112_s1 + $0xd8] sm:$0xff]  }
   0xa   :  { %1188 = vmatpush1.bf16.msra.mxu0 %v2061_v5  ;;  %v2082_v28 = vld [vmem:[%s3112_s1 + $0xe0] sm:$0xff]   ;;  %v2083_v29 = vld [vmem:[%s3112_s1 + $0x68] sm:$0xff]   ;;  %v2085_v31 = vld [vmem:[%s3112_s1 + $0x70] sm:$0xff]  }
   0xb   :  { %1477 = vmatpush1.bf16.msra.mxu1 %v2062_v6  ;;  %1189 = vmatprep.subr.bf16.mxu0 %v2282_v0  ;;  %v2084_v30 = vld [vmem:[%s3112_s1 + $0xe8] sm:$0xff]   ;;  %v2086_v32 = vld [vmem:[%s3112_s1 + $0xf0] sm:$0xff]   ;;  %v2087_v33 = vld [vmem:[%s3112_s1 + $0x78] sm:$0xff]  }
   0xc   :  { %1478 = vmatprep.subr.bf16.mxu1 %v2282_v0  ;;  %v2088_v34 = vld [vmem:[%s3112_s1 + $0xf8] sm:$0xff]   ;;  %v2089_v35 = vld [vmem:[%s3113_s0] ss:$16 sps:$4 sm:$0xff]   ;;  %v2095_v37 = vld [vmem:[%s3113_s0 + $0x24] ss:$16 sps:$4 sm:$0xff]  }
   0xd   :  { %v2092_v36 = vld [vmem:[%s3113_s0 + $0x8] ss:$16 sps:$4 sm:$0xff]   ;;  %v2097_v38 = vld [vmem:[%s3113_s0 + $0x2c] ss:$16 sps:$4 sm:$0xff]   ;;  %v2099_v39 = vld [vmem:[%s3113_s0 + $0x20] ss:$16 sps:$4 sm:$0xff]  }
   0xe   :  { %1190 = vmatpush1.bf16.msra.mxu0 %v2063_v7  ;;  %v2100_v40 = vld [vmem:[%s3113_s0 + $0x28] ss:$16 sps:$4 sm:$0xff]   ;;  %v2101_v41 = vld [vmem:[%s3113_s0 + $0x44] ss:$16 sps:$4 sm:$0xff]   ;;  %v2103_v42 = vld [vmem:[%s3113_s0 + $0x4c] ss:$16 sps:$4 sm:$0xff]  }
   0xf   :  { %1479 = vmatpush1.bf16.msra.mxu1 %v2064_v8  ;;  %1191 = vmatprep.subr.bf16.mxu0 %v2282_v0  ;;  %v2105_v43 = vld [vmem:[%s3113_s0 + $0x40] ss:$16 sps:$4 sm:$0xff]   ;;  %v2106_v44 = vld [vmem:[%s3113_s0 + $0x48] ss:$16 sps:$4 sm:$0xff]   ;;  %v2107_v45 = vld [vmem:[%s3113_s0 + $0x64] ss:$16 sps:$4 sm:$0xff]  }
  0x10   :  { %1480 = vmatprep.subr.bf16.mxu1 %v2282_v0  ;;  %v2109_v46 = vld [vmem:[%s3113_s0 + $0x6c] ss:$16 sps:$4 sm:$0xff]   ;;  %v2111_v47 = vld [vmem:[%s3113_s0 + $0x60] ss:$16 sps:$4 sm:$0xff]   ;;  %v2112_v48 = vld [vmem:[%s3113_s0 + $0x68] ss:$16 sps:$4 sm:$0xff]  }
  0x11   :  { %v2113_v49 = vld [vmem:[%s3113_s0 + $0x84] ss:$16 sps:$4 sm:$0xff]   ;;  %v2115_v50 = vld [vmem:[%s3113_s0 + $0x8c] ss:$16 sps:$4 sm:$0xff]   ;;  %v2117_v51 = vld [vmem:[%s3113_s0 + $0x80] ss:$16 sps:$4 sm:$0xff]  }
  0x12   :  { %1192 = vmatpush1.bf16.msra.mxu0 %v2065_v9  ;;  %v2118_v52 = vld [vmem:[%s3113_s0 + $0x88] ss:$16 sps:$4 sm:$0xff]   ;;  %v2119_v53 = vld [vmem:[%s3113_s0 + $0xa4] ss:$16 sps:$4 sm:$0xff]   ;;  %v2121_v54 = vld [vmem:[%s3113_s0 + $0xac] ss:$16 sps:$4 sm:$0xff]  }
  0x13   :  { %1481 = vmatpush1.bf16.msra.mxu1 %v2066_v10  ;;  %1193 = vmatprep.subr.bf16.mxu0 %v2282_v0  ;;  %v2123_v55 = vld [vmem:[%s3113_s0 + $0xa0] ss:$16 sps:$4 sm:$0xff]   ;;  %v2124_v56 = vld [vmem:[%s3113_s0 + $0xa8] ss:$16 sps:$4 sm:$0xff]   ;;  %v2125_v57 = vld [vmem:[%s3113_s0 + $0xc4] ss:$16 sps:$4 sm:$0xff]  }
  0x14   :  { %1482 = vmatprep.subr.bf16.mxu1 %v2282_v0  ;;  %v2127_v58 = vld [vmem:[%s3113_s0 + $0xcc] ss:$16 sps:$4 sm:$0xff]   ;;  %v2129_v59 = vld [vmem:[%s3113_s0 + $0xc0] ss:$16 sps:$4 sm:$0xff]   ;;  %v2130_v60 = vld [vmem:[%s3113_s0 + $0xc8] ss:$16 sps:$4 sm:$0xff]  }
  0x15   :  { %v2131_v61 = vld [vmem:[%s3113_s0 + $0xe4] ss:$16 sps:$4 sm:$0xff]   ;;  %v2133_v62 = vld [vmem:[%s3113_s0 + $0xec] ss:$16 sps:$4 sm:$0xff]   ;;  %v2135_v63 = vld [vmem:[%s3113_s0 + $0xe0] ss:$16 sps:$4 sm:$0xff]  }
  0x16   :  { %1194 = vmatpush1.bf16.msra.mxu0 %v2067_v11  ;;  %v2137_v1 = vld [vmem:[%s3113_s0 + $0x104] ss:$16 sps:$4 sm:$0xff]   ;;  %v2139_v2 = vld [vmem:[%s3113_s0 + $0x10c] ss:$16 sps:$4 sm:$0xff]   ;;  %v2141_v3 = vld [vmem:[%s3113_s0 + $0x100] ss:$16 sps:$4 sm:$0xff]  }
  0x17   :  { %1483 = vmatpush1.bf16.msra.mxu1 %v2068_v12  ;;  %1195 = vmatprep.subr.bf16.mxu0 %v2282_v0  ;;  %v2142_v4 = vld [vmem:[%s3113_s0 + $0x108] ss:$16 sps:$4 sm:$0xff]   ;;  %v2143_v5 = vld [vmem:[%s3113_s0 + $0x124] ss:$16 sps:$4 sm:$0xff]   ;;  %v2145_v6 = vld [vmem:[%s3113_s0 + $0x12c] ss:$16 sps:$4 sm:$0xff]  }
  0x18   :  { %1484 = vmatprep.subr.bf16.mxu1 %v2282_v0  ;;  %v2147_v7 = vld [vmem:[%s3113_s0 + $0x120] ss:$16 sps:$4 sm:$0xff]   ;;  %v2148_v8 = vld [vmem:[%s3113_s0 + $0x128] ss:$16 sps:$4 sm:$0xff]   ;;  %v2149_v9 = vld [vmem:[%s3113_s0 + $0x144] ss:$16 sps:$4 sm:$0xff]  }
  0x19   :  { %v2151_v10 = vld [vmem:[%s3113_s0 + $0x14c] ss:$16 sps:$4 sm:$0xff]   ;;  %v2153_v11 = vld [vmem:[%s3113_s0 + $0x140] ss:$16 sps:$4 sm:$0xff]   ;;  %v2154_v12 = vld [vmem:[%s3113_s0 + $0x148] ss:$16 sps:$4 sm:$0xff]  }
  0x1a   :  { %1196 = vmatpush1.bf16.msra.mxu0 %v2069_v13  ;;  %v2155_v13 = vld [vmem:[%s3113_s0 + $0x164] ss:$16 sps:$4 sm:$0xff]   ;;  %v2163_v19 = vld [vmem:[%s3113_s0 + $0x18c] ss:$16 sps:$4 sm:$0xff]   ;;  %v2166_v21 = vld [vmem:[%s3113_s0 + $0x188] ss:$16 sps:$4 sm:$0xff]  }
  0x1b   :  { %1485 = vmatpush1.bf16.msra.mxu1 %v2070_v14  ;;  %1197 = vmatprep.subr.bf16.mxu0 %v2282_v0  ;;  %v2157_v14 = vld [vmem:[%s3113_s0 + $0x16c] ss:$16 sps:$4 sm:$0xff]  }
  0x1c   :  { %1486 = vmatprep.subr.bf16.mxu1 %v2282_v0 }
  0x1e   :  { %1198 = vmatpush1.bf16.msra.mxu0 %v2071_v15  ;;  %v2159_v15 = vld [vmem:[%s3113_s0 + $0x160] ss:$16 sps:$4 sm:$0xff]  }
  0x1f   :  { %1487 = vmatpush1.bf16.msra.mxu1 %v2072_v16  ;;  %1199 = vmatprep.subr.bf16.mxu0 %v2282_v0  ;;  %v2575_v16 = vld [vmem:[%s3114_s2] ss:$0 sm:$0xff] }
  0x20   :  { %1488 = vmatprep.subr.bf16.mxu1 %v2282_v0  ;;  %83 = vst [vmem:[%s3115_s3 + $0x1c8] sm:$0xff] %v2575_v16  ;;  %84 = vst [vmem:[%s3115_s3 + $0x1d0] sm:$0xff] %v2575_v16 }
  0x21   :  { %85 = vst [vmem:[%s3115_s3 + $0x1d8] sm:$0xff] %v2575_v16  ;;  %86 = vst [vmem:[%s3115_s3 + $0x1e0] sm:$0xff] %v2575_v16 }
  0x22   :  { %1200 = vmatpush1.bf16.msra.mxu0 %v2073_v17  ;;  %v2160_v17 = vld [vmem:[%s3113_s0 + $0x168] ss:$16 sps:$4 sm:$0xff]   ;;  %87 = vst [vmem:[%s3115_s3 + $0x1e8] sm:$0xff] %v2575_v16  ;;  %88 = vst [vmem:[%s3115_s3 + $0x1f0] sm:$0xff] %v2575_v16 }
  0x23   :  { %1489 = vmatpush1.bf16.msra.mxu1 %v2074_v18  ;;  %1201 = vmatprep.subr.bf16.mxu0 %v2282_v0  ;;  %v2161_v18 = vld [vmem:[%s3113_s0 + $0x184] ss:$16 sps:$4 sm:$0xff]   ;;  %89 = vst [vmem:[%s3115_s3 + $0x1f8] sm:$0xff] %v2575_v16 }
  0x24   :  { %1490 = vmatprep.subr.bf16.mxu1 %v2282_v0 }
  0x26   :  { %1202 = vmatpush1.bf16.msra.mxu0 %v2075_v20  ;;  %v2165_v20 = vld [vmem:[%s3113_s0 + $0x180] ss:$16 sps:$4 sm:$0xff]  }
  0x27   :  { %1491 = vmatpush1.bf16.msra.mxu1 %v2076_v22  ;;  %1203 = vmatprep.subr.bf16.mxu0 %v2282_v0  ;;  %v2167_v22 = vld [vmem:[%s3113_s0 + $0x1a4] ss:$16 sps:$4 sm:$0xff]  }
  0x28   :  { %1492 = vmatprep.subr.bf16.mxu1 %v2282_v0 }
  0x2a   :  { %1204 = vmatpush1.bf16.msra.mxu0 %v2077_v23  ;;  %v2169_v23 = vld [vmem:[%s3113_s0 + $0x1ac] ss:$16 sps:$4 sm:$0xff]  }
  0x2b   :  { %1493 = vmatpush1.bf16.msra.mxu1 %v2078_v24  ;;  %1205 = vmatprep.subr.bf16.mxu0 %v2282_v0  ;;  %v2171_v24 = vld [vmem:[%s3113_s0 + $0x1a0] ss:$16 sps:$4 sm:$0xff]  }
  0x2c   :  { %1494 = vmatprep.subr.bf16.mxu1 %v2282_v0 }
  0x2e   :  { %1206 = vmatpush1.bf16.msra.mxu0 %v2079_v25  ;;  %v2172_v25 = vld [vmem:[%s3113_s0 + $0x1a8] ss:$16 sps:$4 sm:$0xff]  }
  0x2f   :  { %1495 = vmatpush1.bf16.msra.mxu1 %v2080_v26  ;;  %1207 = vmatprep.subr.bf16.mxu0 %v2282_v0  ;;  %v2173_v26 = vld [vmem:[%s3113_s0 + $0x1c4] ss:$16 sps:$4 sm:$0xff]  }
  0x30   :  { %1496 = vmatprep.subr.bf16.mxu1 %v2282_v0 }
  0x32   :  { %1208 = vmatpush1.bf16.msra.mxu0 %v2081_v27  ;;  %v2175_v27 = vld [vmem:[%s3113_s0 + $0x1cc] ss:$16 sps:$4 sm:$0xff]  }
  0x33   :  { %1497 = vmatpush1.bf16.msra.mxu1 %v2082_v28  ;;  %1209 = vmatprep.subr.bf16.mxu0 %v2282_v0  ;;  %v2177_v28 = vld [vmem:[%s3113_s0 + $0x1c0] ss:$16 sps:$4 sm:$0xff]  }
  0x34   :  { %1498 = vmatprep.subr.bf16.mxu1 %v2282_v0 }
  0x36   :  { %1210 = vmatpush1.bf16.msra.mxu0 %v2083_v29  ;;  %v2178_v29 = vld [vmem:[%s3113_s0 + $0x1c8] ss:$16 sps:$4 sm:$0xff]  }
  0x37   :  { %1499 = vmatpush1.bf16.msra.mxu1 %v2084_v30  ;;  %1211 = vmatprep.subr.bf16.mxu0 %v2282_v0  ;;  %v2179_v30 = vld [vmem:[%s3113_s0 + $0x1e4] ss:$16 sps:$4 sm:$0xff]  }
  0x38   :  { %1500 = vmatprep.subr.bf16.mxu1 %v2282_v0 }
  0x3a   :  { %1212 = vmatpush1.bf16.msra.mxu0 %v2085_v31  ;;  %v2181_v31 = vld [vmem:[%s3113_s0 + $0x1ec] ss:$16 sps:$4 sm:$0xff]  }
  0x3b   :  { %1501 = vmatpush1.bf16.msra.mxu1 %v2086_v32  ;;  %1213 = vmatprep.subr.bf16.mxu0 %v2282_v0  ;;  %v2183_v32 = vld [vmem:[%s3113_s0 + $0x1e0] ss:$16 sps:$4 sm:$0xff]  }
  0x3c   :  { %1502 = vmatprep.subr.bf16.mxu1 %v2282_v0  ;;  %v2136_v0 = vld [vmem:[%s3113_s0 + $0xe8] ss:$16 sps:$4 sm:$0xff]  }
  0x3e   :  { %1214 = vmatpush1.bf16.msra.mxu0 %v2087_v33  ;;  %v2184_v33 = vld [vmem:[%s3113_s0 + $0x1e8] ss:$16 sps:$4 sm:$0xff]  }
  0x3f   :  { %1503 = vmatpush1.bf16.msra.mxu1 %v2088_v34  ;;  %v2185_v34 = vld [vmem:[%s3113_s0 + $0x204] ss:$16 sps:$4 sm:$0xff]  }
  0x41   :  { %1216 = vmatmul.mubr.bf16.vlgmr.msra.gmra.mrb[0].mxu0 %v2089_v35  ;;  %v2187_v35 = vld [vmem:[%s3113_s0 + $0x20c] ss:$16 sps:$4 sm:$0xff]  }
  0x42   :  { %1505 = vmatmul.mubr.bf16.vlgmr.msra.gmra.mrb[0].mxu1 %v2092_v36  ;;  %1223 = vmatprep.mubr.bf16.mxu0 %v2095_v37  ;;  %v2189_v36 = vld [vmem:[%s3113_s0 + $0x200] ss:$16 sps:$4 sm:$0xff]   ;;  %v2190_v37 = vld [vmem:[%s3113_s0 + $0x208] ss:$16 sps:$4 sm:$0xff]  }
  0x43   :  { %1512 = vmatprep.mubr.bf16.mxu1 %v2097_v38  ;;  %v2191_v38 = vld [vmem:[%s3113_s0 + $0x224] ss:$16 sps:$4 sm:$0xff]  }
  0x49   :  { %1224 = vmatmul.mubr.bf16.gmra.mrb[4].mxu0 %v2099_v39  ;;  %v2193_v39 = vld [vmem:[%s3113_s0 + $0x22c] ss:$16 sps:$4 sm:$0xff]  }
  0x4a   :  { %1513 = vmatmul.mubr.bf16.gmra.mrb[4].mxu1 %v2100_v40  ;;  %1231 = vmatprep.mubr.bf16.mxu0 %v2101_v41  ;;  %v2195_v40 = vld [vmem:[%s3113_s0 + $0x220] ss:$16 sps:$4 sm:$0xff]   ;;  %v2196_v41 = vld [vmem:[%s3113_s0 + $0x228] ss:$16 sps:$4 sm:$0xff]  }
  0x4b   :  { %1520 = vmatprep.mubr.bf16.mxu1 %v2103_v42  ;;  %v2197_v42 = vld [vmem:[%s3113_s0 + $0x244] ss:$16 sps:$4 sm:$0xff]  }
  0x51   :  { %1232 = vmatmul.mubr.bf16.gmra.mrb[8].mxu0 %v2105_v43  ;;  %v2199_v43 = vld [vmem:[%s3113_s0 + $0x24c] ss:$16 sps:$4 sm:$0xff]  }
  0x52   :  { %1521 = vmatmul.mubr.bf16.gmra.mrb[8].mxu1 %v2106_v44  ;;  %1239 = vmatprep.mubr.bf16.mxu0 %v2107_v45  ;;  %v2201_v44 = vld [vmem:[%s3113_s0 + $0x240] ss:$16 sps:$4 sm:$0xff]   ;;  %v2202_v45 = vld [vmem:[%s3113_s0 + $0x248] ss:$16 sps:$4 sm:$0xff]  }
  0x53   :  { %1528 = vmatprep.mubr.bf16.mxu1 %v2109_v46  ;;  %v2203_v46 = vld [vmem:[%s3113_s0 + $0x264] ss:$16 sps:$4 sm:$0xff]  }
  0x59   :  { %1240 = vmatmul.mubr.bf16.gmra.mrb[12].mxu0 %v2111_v47  ;;  %v2205_v47 = vld [vmem:[%s3113_s0 + $0x26c] ss:$16 sps:$4 sm:$0xff]  }
  0x5a   :  { %1529 = vmatmul.mubr.bf16.gmra.mrb[12].mxu1 %v2112_v48  ;;  %1247 = vmatprep.mubr.bf16.mxu0 %v2113_v49  ;;  %v2207_v48 = vld [vmem:[%s3113_s0 + $0x260] ss:$16 sps:$4 sm:$0xff]   ;;  %v2208_v49 = vld [vmem:[%s3113_s0 + $0x268] ss:$16 sps:$4 sm:$0xff]  }
  0x5b   :  { %1536 = vmatprep.mubr.bf16.mxu1 %v2115_v50  ;;  %v2209_v50 = vld [vmem:[%s3113_s0 + $0x284] ss:$16 sps:$4 sm:$0xff]  }
  0x61   :  { %1248 = vmatmul.mubr.bf16.gmra.mrb[16].mxu0 %v2117_v51  ;;  %v2211_v51 = vld [vmem:[%s3113_s0 + $0x28c] ss:$16 sps:$4 sm:$0xff]  }
  0x62   :  { %1537 = vmatmul.mubr.bf16.gmra.mrb[16].mxu1 %v2118_v52  ;;  %1255 = vmatprep.mubr.bf16.mxu0 %v2119_v53  ;;  %v2213_v52 = vld [vmem:[%s3113_s0 + $0x280] ss:$16 sps:$4 sm:$0xff]   ;;  %v2214_v53 = vld [vmem:[%s3113_s0 + $0x288] ss:$16 sps:$4 sm:$0xff]  }
  0x63   :  { %1544 = vmatprep.mubr.bf16.mxu1 %v2121_v54  ;;  %v2215_v54 = vld [vmem:[%s3113_s0 + $0x2a4] ss:$16 sps:$4 sm:$0xff]  }
  0x69   :  { %1256 = vmatmul.mubr.bf16.gmra.mrb[20].mxu0 %v2123_v55  ;;  %v2217_v55 = vld [vmem:[%s3113_s0 + $0x2ac] ss:$16 sps:$4 sm:$0xff]  }
  0x6a   :  { %1545 = vmatmul.mubr.bf16.gmra.mrb[20].mxu1 %v2124_v56  ;;  %1263 = vmatprep.mubr.bf16.mxu0 %v2125_v57  ;;  %v2219_v56 = vld [vmem:[%s3113_s0 + $0x2a0] ss:$16 sps:$4 sm:$0xff]   ;;  %v2220_v57 = vld [vmem:[%s3113_s0 + $0x2a8] ss:$16 sps:$4 sm:$0xff]  }
  0x6b   :  { %1552 = vmatprep.mubr.bf16.mxu1 %v2127_v58  ;;  %v2221_v58 = vld [vmem:[%s3113_s0 + $0x2c4] ss:$16 sps:$4 sm:$0xff]  }
  0x71   :  { %1264 = vmatmul.mubr.bf16.gmra.mrb[24].mxu0 %v2129_v59  ;;  %v2223_v59 = vld [vmem:[%s3113_s0 + $0x2cc] ss:$16 sps:$4 sm:$0xff]  }
  0x72   :  { %1553 = vmatmul.mubr.bf16.gmra.mrb[24].mxu1 %v2130_v60  ;;  %1271 = vmatprep.mubr.bf16.mxu0 %v2131_v61  ;;  %v2225_v60 = vld [vmem:[%s3113_s0 + $0x2c0] ss:$16 sps:$4 sm:$0xff]   ;;  %v2226_v61 = vld [vmem:[%s3113_s0 + $0x2c8] ss:$16 sps:$4 sm:$0xff]  }
  0x73   :  { %1560 = vmatprep.mubr.bf16.mxu1 %v2133_v62  ;;  %v2227_v62 = vld [vmem:[%s3113_s0 + $0x2e4] ss:$16 sps:$4 sm:$0xff]  }
  0x79   :  { %1272 = vmatmul.mubr.bf16.gmra.mrb[28].mxu0 %v2135_v63  ;;  %v2229_v63 = vld [vmem:[%s3113_s0 + $0x2ec] ss:$16 sps:$4 sm:$0xff]  }
  0x7a   :  { %1561 = vmatmul.mubr.bf16.gmra.mrb[28].mxu1 %v2136_v0  ;;  %1279 = vmatprep.mubr.bf16.mxu0 %v2137_v1  ;;  %v2231_v0 = vld [vmem:[%s3113_s0 + $0x2e0] ss:$16 sps:$4 sm:$0xff]   ;;  %v2232_v1 = vld [vmem:[%s3113_s0 + $0x2e8] ss:$16 sps:$4 sm:$0xff]  }
  0x7b   :  { %1568 = vmatprep.mubr.bf16.mxu1 %v2139_v2  ;;  %v2233_v2 = vld [vmem:[%s3113_s0 + $0x304] ss:$16 sps:$4 sm:$0xff]  }
  0x81   :  { %1280 = vmatmul.mubr.bf16.gmra.mrb[32].mxu0 %v2141_v3  ;;  %v2235_v3 = vld [vmem:[%s3113_s0 + $0x30c] ss:$16 sps:$4 sm:$0xff]  }
  0x82   :  { %1569 = vmatmul.mubr.bf16.gmra.mrb[32].mxu1 %v2142_v4  ;;  %1287 = vmatprep.mubr.bf16.mxu0 %v2143_v5  ;;  %v2237_v4 = vld [vmem:[%s3113_s0 + $0x300] ss:$16 sps:$4 sm:$0xff]   ;;  %v2238_v5 = vld [vmem:[%s3113_s0 + $0x308] ss:$16 sps:$4 sm:$0xff]  }
  0x83   :  { %1576 = vmatprep.mubr.bf16.mxu1 %v2145_v6  ;;  %v2239_v6 = vld [vmem:[%s3113_s0 + $0x324] ss:$16 sps:$4 sm:$0xff]  }
  0x89   :  { %1288 = vmatmul.mubr.bf16.gmra.mrb[36].mxu0 %v2147_v7  ;;  %v2241_v7 = vld [vmem:[%s3113_s0 + $0x32c] ss:$16 sps:$4 sm:$0xff]  }
  0x8a   :  { %1577 = vmatmul.mubr.bf16.gmra.mrb[36].mxu1 %v2148_v8  ;;  %1295 = vmatprep.mubr.bf16.mxu0 %v2149_v9  ;;  %v2243_v8 = vld [vmem:[%s3113_s0 + $0x320] ss:$16 sps:$4 sm:$0xff]   ;;  %v2244_v9 = vld [vmem:[%s3113_s0 + $0x328] ss:$16 sps:$4 sm:$0xff]  }
  0x8b   :  { %1584 = vmatprep.mubr.bf16.mxu1 %v2151_v10  ;;  %v2245_v10 = vld [vmem:[%s3113_s0 + $0x344] ss:$16 sps:$4 sm:$0xff]  }
  0x91   :  { %1296 = vmatmul.mubr.bf16.gmra.mrb[40].mxu0 %v2153_v11  ;;  %v2247_v11 = vld [vmem:[%s3113_s0 + $0x34c] ss:$16 sps:$4 sm:$0xff]  }
  0x92   :  { %1585 = vmatmul.mubr.bf16.gmra.mrb[40].mxu1 %v2154_v12  ;;  %1303 = vmatprep.mubr.bf16.mxu0 %v2155_v13  ;;  %v2249_v12 = vld [vmem:[%s3113_s0 + $0x340] ss:$16 sps:$4 sm:$0xff]   ;;  %v2250_v13 = vld [vmem:[%s3113_s0 + $0x348] ss:$16 sps:$4 sm:$0xff]  }
  0x93   :  { %1592 = vmatprep.mubr.bf16.mxu1 %v2157_v14  ;;  %v2251_v14 = vld [vmem:[%s3113_s0 + $0x364] ss:$16 sps:$4 sm:$0xff]  }
  0x99   :  { %1304 = vmatmul.mubr.bf16.gmra.mrb[44].mxu0 %v2159_v15  ;;  %v2253_v15 = vld [vmem:[%s3113_s0 + $0x36c] ss:$16 sps:$4 sm:$0xff]  }
  0x9a   :  { %1593 = vmatmul.mubr.bf16.gmra.mrb[44].mxu1 %v2160_v17  ;;  %1311 = vmatprep.mubr.bf16.mxu0 %v2161_v18 }
  0x9b   :  { %1600 = vmatprep.mubr.bf16.mxu1 %v2163_v19 }
  0xa1   :  { %1312 = vmatmul.mubr.bf16.gmra.mrb[48].mxu0 %v2165_v20  ;;  %v2255_v20 = vld [vmem:[%s3113_s0 + $0x360] ss:$16 sps:$4 sm:$0xff]  }
  0xa2   :  { %1601 = vmatmul.mubr.bf16.gmra.mrb[48].mxu1 %v2166_v21  ;;  %1319 = vmatprep.mubr.bf16.mxu0 %v2167_v22 }
  0xa3   :  { %1608 = vmatprep.mubr.bf16.mxu1 %v2169_v23 }
  0xa9   :  { %1320 = vmatmul.mubr.bf16.gmra.mrb[52].mxu0 %v2171_v24  ;;  %v2256_v24 = vld [vmem:[%s3113_s0 + $0x368] ss:$16 sps:$4 sm:$0xff]  }
  0xaa   :  { %1609 = vmatmul.mubr.bf16.gmra.mrb[52].mxu1 %v2172_v25  ;;  %1327 = vmatprep.mubr.bf16.mxu0 %v2173_v26  ;;  %v2257_v25 = vld [vmem:[%s3113_s0 + $0x384] ss:$16 sps:$4 sm:$0xff]  }
  0xab   :  { %1616 = vmatprep.mubr.bf16.mxu1 %v2175_v27 }
  0xb1   :  { %1328 = vmatmul.mubr.bf16.gmra.mrb[56].mxu0 %v2177_v28  ;;  %v2259_v28 = vld [vmem:[%s3113_s0 + $0x38c] ss:$16 sps:$4 sm:$0xff]  }
  0xb2   :  { %1617 = vmatmul.mubr.bf16.gmra.mrb[56].mxu1 %v2178_v29  ;;  %1335 = vmatprep.mubr.bf16.mxu0 %v2179_v30 }
  0xb3   :  { %1624 = vmatprep.mubr.bf16.mxu1 %v2181_v31 }
  0xb9   :  { %1336 = vmatmul.mubr.bf16.gmra.mrb[60].mxu0 %v2183_v32 }
  0xba   :  { %1625 = vmatmul.mubr.bf16.gmra.mrb[60].mxu1 %v2184_v33  ;;  %1343 = vmatprep.mubr.bf16.mxu0 %v2185_v34 }
  0xbb   :  { %1632 = vmatprep.mubr.bf16.mxu1 %v2187_v35 }
  0xc1   :  { %1344 = vmatmul.mubr.bf16.gmra.mrb[64].mxu0 %v2189_v36  ;;  %v2261_v36 = vld [vmem:[%s3113_s0 + $0x380] ss:$16 sps:$4 sm:$0xff]  }
  0xc2   :  { %1633 = vmatmul.mubr.bf16.gmra.mrb[64].mxu1 %v2190_v37  ;;  %1351 = vmatprep.mubr.bf16.mxu0 %v2191_v38 }
  0xc3   :  { %1640 = vmatprep.mubr.bf16.mxu1 %v2193_v39 }
  0xc9   :  { %1352 = vmatmul.mubr.bf16.gmra.mrb[68].mxu0 %v2195_v40  ;;  %v2262_v40 = vld [vmem:[%s3113_s0 + $0x388] ss:$16 sps:$4 sm:$0xff]  }
  0xca   :  { %1641 = vmatmul.mubr.bf16.gmra.mrb[68].mxu1 %v2196_v41  ;;  %1359 = vmatprep.mubr.bf16.mxu0 %v2197_v42  ;;  %v2263_v41 = vld [vmem:[%s3113_s0 + $0x3a4] ss:$16 sps:$4 sm:$0xff]  }
  0xcb   :  { %1648 = vmatprep.mubr.bf16.mxu1 %v2199_v43 }
  0xd1   :  { %1360 = vmatmul.mubr.bf16.gmra.mrb[72].mxu0 %v2201_v44  ;;  %v2265_v44 = vld [vmem:[%s3113_s0 + $0x3ac] ss:$16 sps:$4 sm:$0xff]  }
  0xd2   :  { %1649 = vmatmul.mubr.bf16.gmra.mrb[72].mxu1 %v2202_v45  ;;  %1367 = vmatprep.mubr.bf16.mxu0 %v2203_v46 }
  0xd3   :  { %1656 = vmatprep.mubr.bf16.mxu1 %v2205_v47 }
  0xd9   :  { %1368 = vmatmul.mubr.bf16.gmra.mrb[76].mxu0 %v2207_v48 }
  0xda   :  { %1657 = vmatmul.mubr.bf16.gmra.mrb[76].mxu1 %v2208_v49  ;;  %1375 = vmatprep.mubr.bf16.mxu0 %v2209_v50 }
  0xdb   :  { %1664 = vmatprep.mubr.bf16.mxu1 %v2211_v51 }
  0xe1   :  { %1376 = vmatmul.mubr.bf16.gmra.mrb[80].mxu0 %v2213_v52  ;;  %v2267_v52 = vld [vmem:[%s3113_s0 + $0x3a0] ss:$16 sps:$4 sm:$0xff]  }
  0xe2   :  { %1665 = vmatmul.mubr.bf16.gmra.mrb[80].mxu1 %v2214_v53  ;;  %1383 = vmatprep.mubr.bf16.mxu0 %v2215_v54 }
  0xe3   :  { %1672 = vmatprep.mubr.bf16.mxu1 %v2217_v55 }
  0xe9   :  { %1384 = vmatmul.mubr.bf16.gmra.mrb[84].mxu0 %v2219_v56  ;;  %v2268_v56 = vld [vmem:[%s3113_s0 + $0x3a8] ss:$16 sps:$4 sm:$0xff]  }
  0xea   :  { %1673 = vmatmul.mubr.bf16.gmra.mrb[84].mxu1 %v2220_v57  ;;  %1391 = vmatprep.mubr.bf16.mxu0 %v2221_v58  ;;  %v2269_v57 = vld [vmem:[%s3113_s0 + $0x3c4] ss:$16 sps:$4 sm:$0xff]  }
  0xeb   :  { %1680 = vmatprep.mubr.bf16.mxu1 %v2223_v59 }
  0xf1   :  { %1392 = vmatmul.mubr.bf16.gmra.mrb[88].mxu0 %v2225_v60  ;;  %v2271_v60 = vld [vmem:[%s3113_s0 + $0x3cc] ss:$16 sps:$4 sm:$0xff]  }
  0xf2   :  { %1681 = vmatmul.mubr.bf16.gmra.mrb[88].mxu1 %v2226_v61  ;;  %1399 = vmatprep.mubr.bf16.mxu0 %v2227_v62 }
  0xf3   :  { %1688 = vmatprep.mubr.bf16.mxu1 %v2229_v63 }
  0xf9   :  { %1400 = vmatmul.mubr.bf16.gmra.mrb[92].mxu0 %v2231_v0 }
  0xfa   :  { %1689 = vmatmul.mubr.bf16.gmra.mrb[92].mxu1 %v2232_v1  ;;  %1407 = vmatprep.mubr.bf16.mxu0 %v2233_v2 }
  0xfb   :  { %1696 = vmatprep.mubr.bf16.mxu1 %v2235_v3 }
 0x101   :  { %1408 = vmatmul.mubr.bf16.gmra.mrb[96].mxu0 %v2237_v4  ;;  %v2273_v4 = vld [vmem:[%s3113_s0 + $0x3c0] ss:$16 sps:$4 sm:$0xff]  }
 0x102   :  { %1697 = vmatmul.mubr.bf16.gmra.mrb[96].mxu1 %v2238_v5  ;;  %1415 = vmatprep.mubr.bf16.mxu0 %v2239_v6 }
 0x103   :  { %1704 = vmatprep.mubr.bf16.mxu1 %v2241_v7 }
 0x109   :  { %1416 = vmatmul.mubr.bf16.gmra.mrb[100].mxu0 %v2243_v8  ;;  %v2274_v8 = vld [vmem:[%s3113_s0 + $0x3c8] ss:$16 sps:$4 sm:$0xff]  }
 0x10a   :  { %1705 = vmatmul.mubr.bf16.gmra.mrb[100].mxu1 %v2244_v9  ;;  %1423 = vmatprep.mubr.bf16.mxu0 %v2245_v10  ;;  %v2275_v9 = vld [vmem:[%s3113_s0 + $0x3e4] ss:$16 sps:$4 sm:$0xff]  }
 0x10b   :  { %1712 = vmatprep.mubr.bf16.mxu1 %v2247_v11 }
 0x111   :  { %1424 = vmatmul.mubr.bf16.gmra.mrb[104].mxu0 %v2249_v12  ;;  %v2277_v12 = vld [vmem:[%s3113_s0 + $0x3ec] ss:$16 sps:$4 sm:$0xff]  }
 0x112   :  { %1713 = vmatmul.mubr.bf16.gmra.mrb[104].mxu1 %v2250_v13  ;;  %1431 = vmatprep.mubr.bf16.mxu0 %v2251_v14 }
 0x113   :  { %1720 = vmatprep.mubr.bf16.mxu1 %v2253_v15 }
 0x114   :  { %v1217_v17 = vpop.f32.mrb[0].mxu0 }
 0x115   :  { %v1506_v18 = vpop.f32.mrb[0].mxu1  ;;  %v1219_v19 = vpop.f32.mrb[1].mxu0 }
 0x116   :  { %v1507_v21 = vadd.f32 %v1506_v18, %v1217_v17  ;;  %v1508_v22 = vpop.f32.mrb[1].mxu1  ;;  %v1220_v23 = vpop.f32.mrb[2].mxu0 }
 0x117   :  { %v1509_v26 = vpop.f32.mrb[2].mxu1  ;;  %v1222_v27 = vpop.f32.mrb[3].mxu0 }
 0x118   :  { %v1761_v29 = vadd.f32 %v2575_v16, %v1507_v21  ;;  %v1510_v30 = vadd.f32 %v1509_v26, %v1220_v23  ;;  %v1511_v31 = vpop.f32.mrb[3].mxu1  ;;  %v2279_v21 = vld [vmem:[%s3113_s0 + $0x3e0] ss:$16 sps:$4 sm:$0xff]  }
 0x119   :  { %1432 = vmatmul.mubr.bf16.gmra.mrb[108].mxu0 %v2255_v20 }
 0x11a   :  { %1825 = vst [vmem:[%s3115_s3] sm:$0xff] %v1761_v29  ;;  %v1762_v32 = vadd.f32 %v2575_v16, %v1510_v30  ;;  %1721 = vmatmul.mubr.bf16.gmra.mrb[108].mxu1 %v2256_v24  ;;  %1439 = vmatprep.mubr.bf16.mxu0 %v2257_v25  ;;  %v2280_v25 = vld [vmem:[%s3113_s0 + $0x3e8] ss:$16 sps:$4 sm:$0xff]  }
 0x11b   :  { %1728 = vmatprep.mubr.bf16.mxu1 %v2259_v28 }
 0x11c   :  { %1826 = vst [vmem:[%s3115_s3 + $0x8] sm:$0xff] %v1762_v32  ;;  %v1225_v33 = vpop.f32.mrb[4].mxu0 }
 0x11d   :  { %v1514_v34 = vpop.f32.mrb[4].mxu1  ;;  %v1227_v35 = vpop.f32.mrb[5].mxu0 }
 0x11e   :  { %v1515_v37 = vadd.f32 %v1514_v34, %v1225_v33  ;;  %v1516_v38 = vpop.f32.mrb[5].mxu1  ;;  %v1228_v39 = vpop.f32.mrb[6].mxu0 }
 0x11f   :  { %v1517_v42 = vpop.f32.mrb[6].mxu1  ;;  %v1230_v43 = vpop.f32.mrb[7].mxu0 }
 0x120   :  { %v1763_v45 = vadd.f32 %v2575_v16, %v1515_v37  ;;  %v1518_v46 = vadd.f32 %v1517_v42, %v1228_v39  ;;  %v1519_v47 = vpop.f32.mrb[7].mxu1 }
 0x121   :  { %1440 = vmatmul.mubr.bf16.gmra.mrb[112].mxu0 %v2261_v36 }
 0x122   :  { %1827 = vst [vmem:[%s3115_s3 + $0x10] sm:$0xff] %v1763_v45  ;;  %v1764_v48 = vadd.f32 %v2575_v16, %v1518_v46  ;;  %1729 = vmatmul.mubr.bf16.gmra.mrb[112].mxu1 %v2262_v40  ;;  %1447 = vmatprep.mubr.bf16.mxu0 %v2263_v41 }
 0x123   :  { %1736 = vmatprep.mubr.bf16.mxu1 %v2265_v44 }
 0x124   :  { %1828 = vst [vmem:[%s3115_s3 + $0x18] sm:$0xff] %v1764_v48  ;;  %v1233_v49 = vpop.f32.mrb[8].mxu0 }
 0x125   :  { %v1522_v50 = vpop.f32.mrb[8].mxu1  ;;  %v1235_v51 = vpop.f32.mrb[9].mxu0 }
 0x126   :  { %v1523_v53 = vadd.f32 %v1522_v50, %v1233_v49  ;;  %v1524_v54 = vpop.f32.mrb[9].mxu1  ;;  %v1236_v55 = vpop.f32.mrb[10].mxu0 }
 0x127   :  { %v1525_v58 = vpop.f32.mrb[10].mxu1  ;;  %v1238_v59 = vpop.f32.mrb[11].mxu0 }
 0x128   :  { %v1765_v61 = vadd.f32 %v2575_v16, %v1523_v53  ;;  %v1526_v62 = vadd.f32 %v1525_v58, %v1236_v55  ;;  %v1527_v63 = vpop.f32.mrb[11].mxu1 }
 0x129   :  { %1448 = vmatmul.mubr.bf16.gmra.mrb[116].mxu0 %v2267_v52 }
 0x12a   :  { %1829 = vst [vmem:[%s3115_s3 + $0x20] sm:$0xff] %v1765_v61  ;;  %v1766_v0 = vadd.f32 %v2575_v16, %v1526_v62  ;;  %1737 = vmatmul.mubr.bf16.gmra.mrb[116].mxu1 %v2268_v56  ;;  %1455 = vmatprep.mubr.bf16.mxu0 %v2269_v57 }
 0x12b   :  { %1744 = vmatprep.mubr.bf16.mxu1 %v2271_v60 }
 0x12c   :  { %1830 = vst [vmem:[%s3115_s3 + $0x28] sm:$0xff] %v1766_v0  ;;  %v1241_v1 = vpop.f32.mrb[12].mxu0 }
 0x12d   :  { %v1530_v2 = vpop.f32.mrb[12].mxu1  ;;  %v1243_v3 = vpop.f32.mrb[13].mxu0 }
 0x12e   :  { %v1531_v5 = vadd.f32 %v1530_v2, %v1241_v1  ;;  %v1532_v6 = vpop.f32.mrb[13].mxu1  ;;  %v1244_v7 = vpop.f32.mrb[14].mxu0 }
 0x12f   :  { %v1533_v10 = vpop.f32.mrb[14].mxu1  ;;  %v1246_v11 = vpop.f32.mrb[15].mxu0 }
 0x130   :  { %v1767_v13 = vadd.f32 %v2575_v16, %v1531_v5  ;;  %v1534_v14 = vadd.f32 %v1533_v10, %v1244_v7  ;;  %v1535_v15 = vpop.f32.mrb[15].mxu1 }
 0x131   :  { %1456 = vmatmul.mubr.bf16.gmra.mrb[120].mxu0 %v2273_v4 }
 0x132   :  { %1831 = vst [vmem:[%s3115_s3 + $0x30] sm:$0xff] %v1767_v13  ;;  %v1768_v17 = vadd.f32 %v2575_v16, %v1534_v14  ;;  %1745 = vmatmul.mubr.bf16.gmra.mrb[120].mxu1 %v2274_v8  ;;  %1463 = vmatprep.mubr.bf16.mxu0 %v2275_v9 }
 0x133   :  { %1752 = vmatprep.mubr.bf16.mxu1 %v2277_v12 }
 0x134   :  { %1832 = vst [vmem:[%s3115_s3 + $0x38] sm:$0xff] %v1768_v17  ;;  %v1249_v18 = vpop.f32.mrb[16].mxu0 }
 0x135   :  { %v1538_v19 = vpop.f32.mrb[16].mxu1  ;;  %v1251_v20 = vpop.f32.mrb[17].mxu0 }
 0x136   :  { %v1539_v22 = vadd.f32 %v1538_v19, %v1249_v18  ;;  %v1540_v23 = vpop.f32.mrb[17].mxu1  ;;  %v1252_v24 = vpop.f32.mrb[18].mxu0 }
 0x137   :  { %v1541_v26 = vpop.f32.mrb[18].mxu1  ;;  %v1254_v27 = vpop.f32.mrb[19].mxu0 }
 0x138   :  { %v1769_v28 = vadd.f32 %v2575_v16, %v1539_v22  ;;  %v1542_v29 = vadd.f32 %v1541_v26, %v1252_v24  ;;  %v1543_v30 = vpop.f32.mrb[19].mxu1 }
 0x139   :  { %1464 = vmatmul.mubr.bf16.gmra.mrb[124].mxu0 %v2279_v21 }
 0x13a   :  { %1833 = vst [vmem:[%s3115_s3 + $0x40] sm:$0xff] %v1769_v28  ;;  %v1770_v31 = vadd.f32 %v2575_v16, %v1542_v29  ;;  %1753 = vmatmul.mubr.bf16.gmra.mrb[124].mxu1 %v2280_v25 }
 0x13c   :  { %1834 = vst [vmem:[%s3115_s3 + $0x48] sm:$0xff] %v1770_v31  ;;  %v1257_v32 = vpop.f32.mrb[20].mxu0 }
 0x13d   :  { %v1546_v33 = vpop.f32.mrb[20].mxu1  ;;  %v1259_v34 = vpop.f32.mrb[21].mxu0 }
 0x13e   :  { %v1547_v35 = vadd.f32 %v1546_v33, %v1257_v32  ;;  %v1548_v36 = vpop.f32.mrb[21].mxu1  ;;  %v1260_v37 = vpop.f32.mrb[22].mxu0 }
 0x13f   :  { %v1549_v38 = vpop.f32.mrb[22].mxu1  ;;  %v1262_v39 = vpop.f32.mrb[23].mxu0 }
 0x140   :  { %v1771_v40 = vadd.f32 %v2575_v16, %v1547_v35  ;;  %v1550_v41 = vadd.f32 %v1549_v38, %v1260_v37  ;;  %v1551_v42 = vpop.f32.mrb[23].mxu1 }
 0x142   :  { %1835 = vst [vmem:[%s3115_s3 + $0x50] sm:$0xff] %v1771_v40  ;;  %v1772_v43 = vadd.f32 %v2575_v16, %v1550_v41 }
 0x144   :  { %1836 = vst [vmem:[%s3115_s3 + $0x58] sm:$0xff] %v1772_v43  ;;  %v1265_v44 = vpop.f32.mrb[24].mxu0 }
 0x145   :  { %v1554_v45 = vpop.f32.mrb[24].mxu1  ;;  %v1267_v46 = vpop.f32.mrb[25].mxu0 }
 0x146   :  { %v1555_v47 = vadd.f32 %v1554_v45, %v1265_v44  ;;  %v1556_v48 = vpop.f32.mrb[25].mxu1  ;;  %v1268_v49 = vpop.f32.mrb[26].mxu0 }
 0x147   :  { %v1557_v50 = vpop.f32.mrb[26].mxu1  ;;  %v1270_v51 = vpop.f32.mrb[27].mxu0 }
 0x148   :  { %v1773_v52 = vadd.f32 %v2575_v16, %v1555_v47  ;;  %v1558_v53 = vadd.f32 %v1557_v50, %v1268_v49  ;;  %v1559_v54 = vpop.f32.mrb[27].mxu1 }
 0x14a   :  { %1837 = vst [vmem:[%s3115_s3 + $0x60] sm:$0xff] %v1773_v52  ;;  %v1774_v55 = vadd.f32 %v2575_v16, %v1558_v53 }
 0x14c   :  { %1838 = vst [vmem:[%s3115_s3 + $0x68] sm:$0xff] %v1774_v55  ;;  %v1273_v56 = vpop.f32.mrb[28].mxu0 }
 0x14d   :  { %v1562_v57 = vpop.f32.mrb[28].mxu1  ;;  %v1275_v58 = vpop.f32.mrb[29].mxu0 }
 0x14e   :  { %v1563_v59 = vadd.f32 %v1562_v57, %v1273_v56  ;;  %v1564_v60 = vpop.f32.mrb[29].mxu1  ;;  %v1276_v61 = vpop.f32.mrb[30].mxu0 }
 0x14f   :  { %v1565_v62 = vpop.f32.mrb[30].mxu1  ;;  %v1278_v63 = vpop.f32.mrb[31].mxu0 }
 0x150   :  { %v1775_v0 = vadd.f32 %v2575_v16, %v1563_v59  ;;  %v1566_v1 = vadd.f32 %v1565_v62, %v1276_v61  ;;  %v1567_v2 = vpop.f32.mrb[31].mxu1 }
 0x152   :  { %1839 = vst [vmem:[%s3115_s3 + $0x70] sm:$0xff] %v1775_v0  ;;  %v1776_v3 = vadd.f32 %v2575_v16, %v1566_v1 }
 0x154   :  { %1840 = vst [vmem:[%s3115_s3 + $0x78] sm:$0xff] %v1776_v3  ;;  %v1281_v4 = vpop.f32.mrb[32].mxu0 }
 0x155   :  { %v1570_v5 = vpop.f32.mrb[32].mxu1  ;;  %v1283_v6 = vpop.f32.mrb[33].mxu0 }
 0x156   :  { %v1571_v7 = vadd.f32 %v1570_v5, %v1281_v4  ;;  %v1572_v8 = vpop.f32.mrb[33].mxu1  ;;  %v1284_v9 = vpop.f32.mrb[34].mxu0 }
 0x157   :  { %v1573_v10 = vpop.f32.mrb[34].mxu1  ;;  %v1286_v11 = vpop.f32.mrb[35].mxu0 }
 0x158   :  { %v1777_v12 = vadd.f32 %v2575_v16, %v1571_v7  ;;  %v1574_v13 = vadd.f32 %v1573_v10, %v1284_v9  ;;  %v1575_v14 = vpop.f32.mrb[35].mxu1 }
 0x15a   :  { %1841 = vst [vmem:[%s3115_s3 + $0x80] sm:$0xff] %v1777_v12  ;;  %v1778_v15 = vadd.f32 %v2575_v16, %v1574_v13 }
 0x15c   :  { %1842 = vst [vmem:[%s3115_s3 + $0x88] sm:$0xff] %v1778_v15  ;;  %v1289_v17 = vpop.f32.mrb[36].mxu0 }
 0x15d   :  { %v1578_v18 = vpop.f32.mrb[36].mxu1  ;;  %v1291_v19 = vpop.f32.mrb[37].mxu0 }
 0x15e   :  { %v1579_v20 = vadd.f32 %v1578_v18, %v1289_v17  ;;  %v1580_v21 = vpop.f32.mrb[37].mxu1  ;;  %v1292_v22 = vpop.f32.mrb[38].mxu0 }
 0x15f   :  { %v1581_v23 = vpop.f32.mrb[38].mxu1  ;;  %v1294_v24 = vpop.f32.mrb[39].mxu0 }
 0x160   :  { %v1779_v25 = vadd.f32 %v2575_v16, %v1579_v20  ;;  %v1582_v26 = vadd.f32 %v1581_v23, %v1292_v22  ;;  %v1583_v27 = vpop.f32.mrb[39].mxu1 }
 0x162   :  { %1843 = vst [vmem:[%s3115_s3 + $0x90] sm:$0xff] %v1779_v25  ;;  %v1780_v28 = vadd.f32 %v2575_v16, %v1582_v26 }
 0x164   :  { %1844 = vst [vmem:[%s3115_s3 + $0x98] sm:$0xff] %v1780_v28  ;;  %v1297_v29 = vpop.f32.mrb[40].mxu0 }
 0x165   :  { %v1586_v30 = vpop.f32.mrb[40].mxu1  ;;  %v1299_v31 = vpop.f32.mrb[41].mxu0 }
 0x166   :  { %v1587_v32 = vadd.f32 %v1586_v30, %v1297_v29  ;;  %v1588_v33 = vpop.f32.mrb[41].mxu1  ;;  %v1300_v34 = vpop.f32.mrb[42].mxu0 }
 0x167   :  { %v1589_v35 = vpop.f32.mrb[42].mxu1  ;;  %v1302_v36 = vpop.f32.mrb[43].mxu0 }
 0x168   :  { %v1781_v37 = vadd.f32 %v2575_v16, %v1587_v32  ;;  %v1590_v38 = vadd.f32 %v1589_v35, %v1300_v34  ;;  %v1591_v39 = vpop.f32.mrb[43].mxu1 }
 0x16a   :  { %1845 = vst [vmem:[%s3115_s3 + $0xa0] sm:$0xff] %v1781_v37  ;;  %v1782_v40 = vadd.f32 %v2575_v16, %v1590_v38 }
 0x16c   :  { %1846 = vst [vmem:[%s3115_s3 + $0xa8] sm:$0xff] %v1782_v40  ;;  %v1305_v41 = vpop.f32.mrb[44].mxu0 }
 0x16d   :  { %v1594_v42 = vpop.f32.mrb[44].mxu1  ;;  %v1307_v43 = vpop.f32.mrb[45].mxu0 }
 0x16e   :  { %v1595_v44 = vadd.f32 %v1594_v42, %v1305_v41  ;;  %v1596_v45 = vpop.f32.mrb[45].mxu1  ;;  %v1308_v46 = vpop.f32.mrb[46].mxu0 }
 0x16f   :  { %v1597_v47 = vpop.f32.mrb[46].mxu1  ;;  %v1310_v48 = vpop.f32.mrb[47].mxu0 }
 0x170   :  { %v1783_v49 = vadd.f32 %v2575_v16, %v1595_v44  ;;  %v1598_v50 = vadd.f32 %v1597_v47, %v1308_v46  ;;  %v1599_v51 = vpop.f32.mrb[47].mxu1 }
 0x172   :  { %1847 = vst [vmem:[%s3115_s3 + $0xb0] sm:$0xff] %v1783_v49  ;;  %v1784_v52 = vadd.f32 %v2575_v16, %v1598_v50 }
 0x174   :  { %1848 = vst [vmem:[%s3115_s3 + $0xb8] sm:$0xff] %v1784_v52  ;;  %v1313_v53 = vpop.f32.mrb[48].mxu0 }
 0x175   :  { %v1602_v54 = vpop.f32.mrb[48].mxu1  ;;  %v1315_v55 = vpop.f32.mrb[49].mxu0 }
 0x176   :  { %v1603_v56 = vadd.f32 %v1602_v54, %v1313_v53  ;;  %v1604_v57 = vpop.f32.mrb[49].mxu1  ;;  %v1316_v58 = vpop.f32.mrb[50].mxu0 }
 0x177   :  { %v1605_v59 = vpop.f32.mrb[50].mxu1  ;;  %v1318_v60 = vpop.f32.mrb[51].mxu0 }
 0x178   :  { %v1785_v61 = vadd.f32 %v2575_v16, %v1603_v56  ;;  %v1606_v62 = vadd.f32 %v1605_v59, %v1316_v58  ;;  %v1607_v63 = vpop.f32.mrb[51].mxu1 }
 0x17a   :  { %1849 = vst [vmem:[%s3115_s3 + $0xc0] sm:$0xff] %v1785_v61  ;;  %v1786_v0 = vadd.f32 %v2575_v16, %v1606_v62 }
 0x17c   :  { %1850 = vst [vmem:[%s3115_s3 + $0xc8] sm:$0xff] %v1786_v0  ;;  %v1321_v1 = vpop.f32.mrb[52].mxu0 }
 0x17d   :  { %v1610_v2 = vpop.f32.mrb[52].mxu1  ;;  %v1323_v3 = vpop.f32.mrb[53].mxu0 }
 0x17e   :  { %v1611_v4 = vadd.f32 %v1610_v2, %v1321_v1  ;;  %v1612_v5 = vpop.f32.mrb[53].mxu1  ;;  %v1324_v6 = vpop.f32.mrb[54].mxu0 }
 0x17f   :  { %v1613_v7 = vpop.f32.mrb[54].mxu1  ;;  %v1326_v8 = vpop.f32.mrb[55].mxu0 }
 0x180   :  { %v1787_v9 = vadd.f32 %v2575_v16, %v1611_v4  ;;  %v1614_v10 = vadd.f32 %v1613_v7, %v1324_v6  ;;  %v1615_v11 = vpop.f32.mrb[55].mxu1 }
 0x182   :  { %1851 = vst [vmem:[%s3115_s3 + $0xd0] sm:$0xff] %v1787_v9  ;;  %v1788_v12 = vadd.f32 %v2575_v16, %v1614_v10 }
 0x184   :  { %1852 = vst [vmem:[%s3115_s3 + $0xd8] sm:$0xff] %v1788_v12  ;;  %v1329_v13 = vpop.f32.mrb[56].mxu0 }
 0x185   :  { %v1618_v14 = vpop.f32.mrb[56].mxu1  ;;  %v1331_v15 = vpop.f32.mrb[57].mxu0 }
 0x186   :  { %v1619_v17 = vadd.f32 %v1618_v14, %v1329_v13  ;;  %v1620_v18 = vpop.f32.mrb[57].mxu1  ;;  %v1332_v19 = vpop.f32.mrb[58].mxu0 }
 0x187   :  { %v1621_v20 = vpop.f32.mrb[58].mxu1  ;;  %v1334_v21 = vpop.f32.mrb[59].mxu0 }
 0x188   :  { %v1789_v22 = vadd.f32 %v2575_v16, %v1619_v17  ;;  %v1622_v23 = vadd.f32 %v1621_v20, %v1332_v19  ;;  %v1623_v24 = vpop.f32.mrb[59].mxu1 }
 0x18a   :  { %1853 = vst [vmem:[%s3115_s3 + $0xe0] sm:$0xff] %v1789_v22  ;;  %v1790_v25 = vadd.f32 %v2575_v16, %v1622_v23 }
 0x18c   :  { %1854 = vst [vmem:[%s3115_s3 + $0xe8] sm:$0xff] %v1790_v25  ;;  %v1337_v26 = vpop.f32.mrb[60].mxu0 }
 0x18d   :  { %v1626_v27 = vpop.f32.mrb[60].mxu1  ;;  %v1339_v28 = vpop.f32.mrb[61].mxu0 }
 0x18e   :  { %v1627_v29 = vadd.f32 %v1626_v27, %v1337_v26  ;;  %v1628_v30 = vpop.f32.mrb[61].mxu1  ;;  %v1340_v31 = vpop.f32.mrb[62].mxu0 }
 0x18f   :  { %v1629_v32 = vpop.f32.mrb[62].mxu1  ;;  %v1342_v33 = vpop.f32.mrb[63].mxu0 }
 0x190   :  { %v1791_v34 = vadd.f32 %v2575_v16, %v1627_v29  ;;  %v1630_v35 = vadd.f32 %v1629_v32, %v1340_v31  ;;  %v1631_v36 = vpop.f32.mrb[63].mxu1 }
 0x192   :  { %1855 = vst [vmem:[%s3115_s3 + $0xf0] sm:$0xff] %v1791_v34  ;;  %v1792_v37 = vadd.f32 %v2575_v16, %v1630_v35 }
 0x194   :  { %1856 = vst [vmem:[%s3115_s3 + $0xf8] sm:$0xff] %v1792_v37  ;;  %v1345_v38 = vpop.f32.mrb[64].mxu0 }
 0x195   :  { %v1634_v39 = vpop.f32.mrb[64].mxu1  ;;  %v1347_v40 = vpop.f32.mrb[65].mxu0 }
 0x196   :  { %v1635_v41 = vadd.f32 %v1634_v39, %v1345_v38  ;;  %v1636_v42 = vpop.f32.mrb[65].mxu1  ;;  %v1348_v43 = vpop.f32.mrb[66].mxu0 }
 0x197   :  { %v1637_v44 = vpop.f32.mrb[66].mxu1  ;;  %v1350_v45 = vpop.f32.mrb[67].mxu0 }
 0x198   :  { %v1793_v46 = vadd.f32 %v2575_v16, %v1635_v41  ;;  %v1638_v47 = vadd.f32 %v1637_v44, %v1348_v43  ;;  %v1639_v48 = vpop.f32.mrb[67].mxu1 }
 0x19a   :  { %1857 = vst [vmem:[%s3115_s3 + $0x100] sm:$0xff] %v1793_v46  ;;  %v1794_v49 = vadd.f32 %v2575_v16, %v1638_v47 }
 0x19c   :  { %1858 = vst [vmem:[%s3115_s3 + $0x108] sm:$0xff] %v1794_v49  ;;  %v1353_v50 = vpop.f32.mrb[68].mxu0 }
 0x19d   :  { %v1642_v51 = vpop.f32.mrb[68].mxu1  ;;  %v1355_v52 = vpop.f32.mrb[69].mxu0 }
 0x19e   :  { %v1643_v53 = vadd.f32 %v1642_v51, %v1353_v50  ;;  %v1644_v54 = vpop.f32.mrb[69].mxu1  ;;  %v1356_v55 = vpop.f32.mrb[70].mxu0 }
 0x19f   :  { %v1645_v56 = vpop.f32.mrb[70].mxu1  ;;  %v1358_v57 = vpop.f32.mrb[71].mxu0 }
 0x1a0   :  { %v1795_v58 = vadd.f32 %v2575_v16, %v1643_v53  ;;  %v1646_v59 = vadd.f32 %v1645_v56, %v1356_v55  ;;  %v1647_v60 = vpop.f32.mrb[71].mxu1 }
 0x1a2   :  { %1859 = vst [vmem:[%s3115_s3 + $0x110] sm:$0xff] %v1795_v58  ;;  %v1796_v61 = vadd.f32 %v2575_v16, %v1646_v59 }
 0x1a4   :  { %1860 = vst [vmem:[%s3115_s3 + $0x118] sm:$0xff] %v1796_v61  ;;  %v1361_v62 = vpop.f32.mrb[72].mxu0 }
 0x1a5   :  { %v1650_v63 = vpop.f32.mrb[72].mxu1  ;;  %v1363_v0 = vpop.f32.mrb[73].mxu0 }
 0x1a6   :  { %v1651_v1 = vadd.f32 %v1650_v63, %v1361_v62  ;;  %v1652_v2 = vpop.f32.mrb[73].mxu1  ;;  %v1364_v3 = vpop.f32.mrb[74].mxu0 }
 0x1a7   :  { %v1653_v4 = vpop.f32.mrb[74].mxu1  ;;  %v1366_v5 = vpop.f32.mrb[75].mxu0 }
 0x1a8   :  { %v1797_v6 = vadd.f32 %v2575_v16, %v1651_v1  ;;  %v1654_v7 = vadd.f32 %v1653_v4, %v1364_v3  ;;  %v1655_v8 = vpop.f32.mrb[75].mxu1 }
 0x1aa   :  { %1861 = vst [vmem:[%s3115_s3 + $0x120] sm:$0xff] %v1797_v6  ;;  %v1798_v9 = vadd.f32 %v2575_v16, %v1654_v7 }
 0x1ac   :  { %1862 = vst [vmem:[%s3115_s3 + $0x128] sm:$0xff] %v1798_v9  ;;  %v1369_v10 = vpop.f32.mrb[76].mxu0 }
 0x1ad   :  { %v1658_v11 = vpop.f32.mrb[76].mxu1  ;;  %v1371_v12 = vpop.f32.mrb[77].mxu0 }
 0x1ae   :  { %v1659_v13 = vadd.f32 %v1658_v11, %v1369_v10  ;;  %v1660_v14 = vpop.f32.mrb[77].mxu1  ;;  %v1372_v15 = vpop.f32.mrb[78].mxu0 }
 0x1af   :  { %v1661_v17 = vpop.f32.mrb[78].mxu1  ;;  %v1374_v18 = vpop.f32.mrb[79].mxu0 }
 0x1b0   :  { %v1799_v19 = vadd.f32 %v2575_v16, %v1659_v13  ;;  %v1662_v20 = vadd.f32 %v1661_v17, %v1372_v15  ;;  %v1663_v21 = vpop.f32.mrb[79].mxu1  ;;  %v2281_v15 = vld [vmem:[%s3115_s3 + $0x1c8] sm:$0xff] }
 0x1b2   :  { %1863 = vst [vmem:[%s3115_s3 + $0x130] sm:$0xff] %v1799_v19  ;;  %v1800_v22 = vadd.f32 %v2575_v16, %v1662_v20 }
 0x1b4   :  { %1864 = vst [vmem:[%s3115_s3 + $0x138] sm:$0xff] %v1800_v22  ;;  %v1377_v23 = vpop.f32.mrb[80].mxu0 }
 0x1b5   :  { %v1666_v24 = vpop.f32.mrb[80].mxu1  ;;  %v1379_v25 = vpop.f32.mrb[81].mxu0 }
 0x1b6   :  { %v1667_v26 = vadd.f32 %v1666_v24, %v1377_v23  ;;  %v1668_v27 = vpop.f32.mrb[81].mxu1  ;;  %v1380_v28 = vpop.f32.mrb[82].mxu0 }
 0x1b7   :  { %v1669_v29 = vpop.f32.mrb[82].mxu1  ;;  %v1382_v30 = vpop.f32.mrb[83].mxu0 }
 0x1b8   :  { %v1801_v31 = vadd.f32 %v2575_v16, %v1667_v26  ;;  %v1670_v32 = vadd.f32 %v1669_v29, %v1380_v28  ;;  %v1671_v33 = vpop.f32.mrb[83].mxu1 }
 0x1ba   :  { %1865 = vst [vmem:[%s3115_s3 + $0x140] sm:$0xff] %v1801_v31  ;;  %v1802_v34 = vadd.f32 %v2575_v16, %v1670_v32 }
 0x1bc   :  { %1866 = vst [vmem:[%s3115_s3 + $0x148] sm:$0xff] %v1802_v34  ;;  %v1385_v35 = vpop.f32.mrb[84].mxu0 }
 0x1bd   :  { %v1674_v36 = vpop.f32.mrb[84].mxu1  ;;  %v1387_v37 = vpop.f32.mrb[85].mxu0 }
 0x1be   :  { %v1675_v38 = vadd.f32 %v1674_v36, %v1385_v35  ;;  %v1676_v39 = vpop.f32.mrb[85].mxu1  ;;  %v1388_v40 = vpop.f32.mrb[86].mxu0 }
 0x1bf   :  { %v1677_v41 = vpop.f32.mrb[86].mxu1  ;;  %v1390_v42 = vpop.f32.mrb[87].mxu0 }
 0x1c0   :  { %v1803_v43 = vadd.f32 %v2575_v16, %v1675_v38  ;;  %v1678_v44 = vadd.f32 %v1677_v41, %v1388_v40  ;;  %v1679_v45 = vpop.f32.mrb[87].mxu1 }
 0x1c2   :  { %1867 = vst [vmem:[%s3115_s3 + $0x150] sm:$0xff] %v1803_v43  ;;  %v1804_v46 = vadd.f32 %v2575_v16, %v1678_v44 }
 0x1c4   :  { %1868 = vst [vmem:[%s3115_s3 + $0x158] sm:$0xff] %v1804_v46  ;;  %v1393_v47 = vpop.f32.mrb[88].mxu0 }
 0x1c5   :  { %v1682_v48 = vpop.f32.mrb[88].mxu1  ;;  %v1395_v49 = vpop.f32.mrb[89].mxu0 }
 0x1c6   :  { %v1683_v50 = vadd.f32 %v1682_v48, %v1393_v47  ;;  %v1684_v51 = vpop.f32.mrb[89].mxu1  ;;  %v1396_v52 = vpop.f32.mrb[90].mxu0 }
 0x1c7   :  { %v1685_v53 = vpop.f32.mrb[90].mxu1  ;;  %v1398_v54 = vpop.f32.mrb[91].mxu0 }
 0x1c8   :  { %v1805_v55 = vadd.f32 %v2575_v16, %v1683_v50  ;;  %v1686_v56 = vadd.f32 %v1685_v53, %v1396_v52  ;;  %v1687_v57 = vpop.f32.mrb[91].mxu1 }
 0x1ca   :  { %1869 = vst [vmem:[%s3115_s3 + $0x160] sm:$0xff] %v1805_v55  ;;  %v1806_v58 = vadd.f32 %v2575_v16, %v1686_v56 }
 0x1cc   :  { %1870 = vst [vmem:[%s3115_s3 + $0x168] sm:$0xff] %v1806_v58  ;;  %v1401_v59 = vpop.f32.mrb[92].mxu0 }
 0x1cd   :  { %v1690_v60 = vpop.f32.mrb[92].mxu1  ;;  %v1403_v61 = vpop.f32.mrb[93].mxu0 }
 0x1ce   :  { %v1691_v62 = vadd.f32 %v1690_v60, %v1401_v59  ;;  %v1692_v63 = vpop.f32.mrb[93].mxu1  ;;  %v1404_v0 = vpop.f32.mrb[94].mxu0 }
 0x1cf   :  { %v1693_v1 = vpop.f32.mrb[94].mxu1  ;;  %v1406_v2 = vpop.f32.mrb[95].mxu0 }
 0x1d0   :  { %v1807_v3 = vadd.f32 %v2575_v16, %v1691_v62  ;;  %v1694_v4 = vadd.f32 %v1693_v1, %v1404_v0  ;;  %v1695_v5 = vpop.f32.mrb[95].mxu1  ;;  %v216_v62 = vld [vmem:[%s3115_s3 + $0x1c8] sm:$0xff] }
 0x1d2   :  { %1871 = vst [vmem:[%s3115_s3 + $0x170] sm:$0xff] %v1807_v3  ;;  %v1808_v6 = vadd.f32 %v2575_v16, %v1694_v4 }
 0x1d4   :  { %1872 = vst [vmem:[%s3115_s3 + $0x178] sm:$0xff] %v1808_v6  ;;  %v1409_v7 = vpop.f32.mrb[96].mxu0  ;;  %v217_v6 = vld [vmem:[%s3115_s3 + $0x1d0] sm:$0xff] }
 0x1d5   :  { %v1698_v8 = vpop.f32.mrb[96].mxu1  ;;  %v1411_v9 = vpop.f32.mrb[97].mxu0 }
 0x1d6   :  { %v1699_v10 = vadd.f32 %v1698_v8, %v1409_v7  ;;  %v1700_v11 = vpop.f32.mrb[97].mxu1  ;;  %v1412_v12 = vpop.f32.mrb[98].mxu0 }
 0x1d7   :  { %v1701_v13 = vpop.f32.mrb[98].mxu1  ;;  %v1414_v14 = vpop.f32.mrb[99].mxu0 }
 0x1d8   :  { %v1809_v17 = vadd.f32 %v2281_v15, %v1699_v10  ;;  %v1702_v18 = vadd.f32 %v1701_v13, %v1412_v12  ;;  %v1703_v19 = vpop.f32.mrb[99].mxu1  ;;  %v218_v12 = vld [vmem:[%s3115_s3 + $0x1d8] sm:$0xff] }
 0x1da   :  { %1873 = vst [vmem:[%s3115_s3 + $0x180] sm:$0xff] %v1809_v17  ;;  %v1810_v16 = vadd.f32 %v2281_v15, %v1702_v18 }
 0x1dc   :  { %1874 = vst [vmem:[%s3115_s3 + $0x188] sm:$0xff] %v1810_v16  ;;  %v1417_v20 = vpop.f32.mrb[100].mxu0 }
 0x1dd   :  { %v1706_v21 = vpop.f32.mrb[100].mxu1  ;;  %v1419_v22 = vpop.f32.mrb[101].mxu0 }
 0x1de   :  { %v1707_v23 = vadd.f32 %v1706_v21, %v1417_v20  ;;  %v1708_v24 = vpop.f32.mrb[101].mxu1  ;;  %v1420_v25 = vpop.f32.mrb[102].mxu0  ;;  %v219_v20 = vld [vmem:[%s3115_s3 + $0x1e0] sm:$0xff] }
 0x1df   :  { %v1709_v26 = vpop.f32.mrb[102].mxu1  ;;  %v1422_v27 = vpop.f32.mrb[103].mxu0 }
 0x1e0   :  { %v1811_v28 = vadd.f32 %v2281_v15, %v1707_v23  ;;  %v1710_v29 = vadd.f32 %v1709_v26, %v1420_v25  ;;  %v1711_v30 = vpop.f32.mrb[103].mxu1  ;;  %v220_v26 = vld [vmem:[%s3115_s3 + $0x1e8] sm:$0xff] }
 0x1e2   :  { %1875 = vst [vmem:[%s3115_s3 + $0x190] sm:$0xff] %v1811_v28  ;;  %v1812_v31 = vadd.f32 %v2281_v15, %v1710_v29 }
 0x1e4   :  { %1876 = vst [vmem:[%s3115_s3 + $0x198] sm:$0xff] %v1812_v31  ;;  %v1425_v32 = vpop.f32.mrb[104].mxu0 }
 0x1e5   :  { %v1714_v33 = vpop.f32.mrb[104].mxu1  ;;  %v1427_v34 = vpop.f32.mrb[105].mxu0 }
 0x1e6   :  { %v1715_v35 = vadd.f32 %v1714_v33, %v1425_v32  ;;  %v1716_v36 = vpop.f32.mrb[105].mxu1  ;;  %v1428_v37 = vpop.f32.mrb[106].mxu0  ;;  %v221_v34 = vld [vmem:[%s3115_s3 + $0x1f0] sm:$0xff] }
 0x1e7   :  { %v1717_v38 = vpop.f32.mrb[106].mxu1  ;;  %v1430_v39 = vpop.f32.mrb[107].mxu0 }
 0x1e8   :  { %v1813_v40 = vadd.f32 %v2281_v15, %v1715_v35  ;;  %v1718_v41 = vadd.f32 %v1717_v38, %v1428_v37  ;;  %v1719_v42 = vpop.f32.mrb[107].mxu1 }
 0x1ea   :  { %1877 = vst [vmem:[%s3115_s3 + $0x1a0] sm:$0xff] %v1813_v40  ;;  %v1814_v43 = vadd.f32 %v2281_v15, %v1718_v41  ;;  %v222_v40 = vld [vmem:[%s3115_s3 + $0x1f8] sm:$0xff] }
 0x1ec   :  { %1878 = vst [vmem:[%s3115_s3 + $0x1a8] sm:$0xff] %v1814_v43  ;;  %v1433_v44 = vpop.f32.mrb[108].mxu0 }
 0x1ed   :  { %v1722_v45 = vpop.f32.mrb[108].mxu1  ;;  %v1435_v46 = vpop.f32.mrb[109].mxu0 }
 0x1ee   :  { %v1723_v47 = vadd.f32 %v1722_v45, %v1433_v44  ;;  %v1724_v48 = vpop.f32.mrb[109].mxu1  ;;  %v1436_v49 = vpop.f32.mrb[110].mxu0 }
 0x1ef   :  { %v1725_v50 = vpop.f32.mrb[110].mxu1  ;;  %v1438_v51 = vpop.f32.mrb[111].mxu0 }
 0x1f0   :  { %v1815_v52 = vadd.f32 %v2281_v15, %v1723_v47  ;;  %v1726_v53 = vadd.f32 %v1725_v50, %v1436_v49  ;;  %v1727_v54 = vpop.f32.mrb[111].mxu1 }
 0x1f2   :  { %1879 = vst [vmem:[%s3115_s3 + $0x1b0] sm:$0xff] %v1815_v52  ;;  %v1816_v55 = vadd.f32 %v2281_v15, %v1726_v53 }
 0x1f4   :  { %1880 = vst [vmem:[%s3115_s3 + $0x1b8] sm:$0xff] %v1816_v55  ;;  %v1441_v56 = vpop.f32.mrb[112].mxu0 }
 0x1f5   :  { %v1730_v57 = vpop.f32.mrb[112].mxu1  ;;  %v1443_v58 = vpop.f32.mrb[113].mxu0 }
 0x1f6   :  { %v1731_v59 = vadd.f32 %v1730_v57, %v1441_v56  ;;  %v1732_v60 = vpop.f32.mrb[113].mxu1  ;;  %v1444_v61 = vpop.f32.mrb[114].mxu0 }
 0x1f7   :  { %v1733_v63 = vpop.f32.mrb[114].mxu1  ;;  %v1446_v0 = vpop.f32.mrb[115].mxu0 }
 0x1f8   :  { %v1817_v1 = vadd.f32 %v2281_v15, %v1731_v59  ;;  %v1734_v2 = vadd.f32 %v1733_v63, %v1444_v61  ;;  %v1735_v3 = vpop.f32.mrb[115].mxu1 }
 0x1fa   :  { %1881 = vst [vmem:[%s3115_s3 + $0x1c0] sm:$0xff] %v1817_v1  ;;  %v1818_v4 = vadd.f32 %v1734_v2, %v216_v62 }
 0x1fc   :  { %1882 = vst [vmem:[%s3115_s3 + $0x1c8] sm:$0xff] %v1818_v4  ;;  %v1449_v5 = vpop.f32.mrb[116].mxu0 }
 0x1fd   :  { %v1738_v7 = vpop.f32.mrb[116].mxu1  ;;  %v1451_v8 = vpop.f32.mrb[117].mxu0 }
 0x1fe   :  { %v1739_v9 = vadd.f32 %v1738_v7, %v1449_v5  ;;  %v1740_v10 = vpop.f32.mrb[117].mxu1  ;;  %v1452_v11 = vpop.f32.mrb[118].mxu0 }
 0x1ff   :  { %v1741_v13 = vpop.f32.mrb[118].mxu1  ;;  %v1454_v14 = vpop.f32.mrb[119].mxu0 }
 0x200   :  { %v1819_v15 = vadd.f32 %v1739_v9, %v217_v6  ;;  %v1742_v17 = vadd.f32 %v1741_v13, %v1452_v11  ;;  %v1743_v18 = vpop.f32.mrb[119].mxu1 }
 0x202   :  { %1883 = vst [vmem:[%s3115_s3 + $0x1d0] sm:$0xff] %v1819_v15  ;;  %v1820_v19 = vadd.f32 %v1742_v17, %v218_v12 }
 0x204   :  { %1884 = vst [vmem:[%s3115_s3 + $0x1d8] sm:$0xff] %v1820_v19  ;;  %v1457_v16 = vpop.f32.mrb[120].mxu0 }
 0x205   :  { %v1746_v21 = vpop.f32.mrb[120].mxu1  ;;  %v1459_v22 = vpop.f32.mrb[121].mxu0 }
 0x206   :  { %v1747_v23 = vadd.f32 %v1746_v21, %v1457_v16  ;;  %v1748_v24 = vpop.f32.mrb[121].mxu1  ;;  %v1460_v25 = vpop.f32.mrb[122].mxu0 }
 0x207   :  { %v1749_v27 = vpop.f32.mrb[122].mxu1  ;;  %v1462_v28 = vpop.f32.mrb[123].mxu0 }
 0x208   :  { %v1821_v29 = vadd.f32 %v1747_v23, %v219_v20  ;;  %v1750_v30 = vadd.f32 %v1749_v27, %v1460_v25  ;;  %v1751_v31 = vpop.f32.mrb[123].mxu1 }
 0x20a   :  { %1885 = vst [vmem:[%s3115_s3 + $0x1e0] sm:$0xff] %v1821_v29  ;;  %v1822_v32 = vadd.f32 %v1750_v30, %v220_v26 }
 0x20c   :  { %1886 = vst [vmem:[%s3115_s3 + $0x1e8] sm:$0xff] %v1822_v32  ;;  %v1465_v33 = vpop.f32.mrb[124].mxu0 }
 0x20d   :  { %v1754_v35 = vpop.f32.mrb[124].mxu1  ;;  %v1467_v36 = vpop.f32.mrb[125].mxu0 }
 0x20e   :  { %v1755_v37 = vadd.f32 %v1754_v35, %v1465_v33  ;;  %v1756_v38 = vpop.f32.mrb[125].mxu1  ;;  %v1468_v39 = vpop.f32.mrb[126].mxu0 }
 0x20f   :  { %v1757_v41 = vpop.f32.mrb[126].mxu1  ;;  %v1470_v42 = vpop.f32.mrb[127].mxu0 }
 0x210   :  { %v1823_v43 = vadd.f32 %v1755_v37, %v221_v34  ;;  %v1758_v44 = vadd.f32 %v1757_v41, %v1468_v39  ;;  %v1759_v45 = vpop.f32.mrb[127].mxu1 }
 0x212   :  { %1887 = vst [vmem:[%s3115_s3 + $0x1f0] sm:$0xff] %v1823_v43  ;;  %v1824_v46 = vadd.f32 %v1758_v44, %v222_v40 }
 0x214   :  { %1888 = vst [vmem:[%s3115_s3 + $0x1f8] sm:$0xff] %v1824_v46 }

// kernel: variational_gcn_encoder.2
= control target key start
LH: loop header
LB: loop body
LE: loop exit
PB: predicated region body
PF: predicated region fallthrough
CT: control target
= control target key end

     0   :  { %v2476_v0 = vmov 0   ;;  %s3414_s1 = inlined_call_operand.vmem [shape: bf16[512,128], index: 1, kind: input, shape index: {}]   ;;  %s3415_s0 = inlined_call_operand.vmem [shape: bf16[512,512], index: 0, kind: input, shape index: {}]   ;;  %s3416_s2 = inlined_call_operand.vmem [shape: f32[1,128], index: 2, kind: input, shape index: {}]   ;;  %s3417_s3 = inlined_call_operand.vmem [shape: f32[512,128], index: 3, kind: output, shape index: {}]  }
   0x1   :  { %1183 = vmatprep.subr.bf16.mxu0 %v2476_v0  ;;  %1472 = vmatprep.subr.bf16.mxu1 %v2476_v0  ;;  %v2252_v1 = vld [vmem:[%s3414_s1] sm:$0xff]   ;;  %v2254_v3 = vld [vmem:[%s3414_s1 + $0x8] sm:$0xff]   ;;  %v2256_v5 = vld [vmem:[%s3414_s1 + $0x10] sm:$0xff]  }
   0x2   :  { %v2253_v2 = vld [vmem:[%s3414_s1 + $0x80] sm:$0xff]   ;;  %1184 = vmatpush1.bf16.msra.mxu0 %v2252_v1  ;;  %v2255_v4 = vld [vmem:[%s3414_s1 + $0x88] sm:$0xff]   ;;  %v2257_v6 = vld [vmem:[%s3414_s1 + $0x90] sm:$0xff]  }
   0x3   :  { %1473 = vmatpush1.bf16.msra.mxu1 %v2253_v2  ;;  %1185 = vmatprep.subr.bf16.mxu0 %v2476_v0  ;;  %v2258_v7 = vld [vmem:[%s3414_s1 + $0x18] sm:$0xff]   ;;  %v2260_v9 = vld [vmem:[%s3414_s1 + $0x20] sm:$0xff]   ;;  %v2262_v11 = vld [vmem:[%s3414_s1 + $0x28] sm:$0xff]  }
   0x4   :  { %1474 = vmatprep.subr.bf16.mxu1 %v2476_v0  ;;  %v2259_v8 = vld [vmem:[%s3414_s1 + $0x98] sm:$0xff]   ;;  %v2261_v10 = vld [vmem:[%s3414_s1 + $0xa0] sm:$0xff]   ;;  %v2263_v12 = vld [vmem:[%s3414_s1 + $0xa8] sm:$0xff]  }
   0x5   :  { %v2264_v13 = vld [vmem:[%s3414_s1 + $0x30] sm:$0xff]   ;;  %v2266_v15 = vld [vmem:[%s3414_s1 + $0x38] sm:$0xff]   ;;  %v2268_v17 = vld [vmem:[%s3414_s1 + $0x40] sm:$0xff]  }
   0x6   :  { %1186 = vmatpush1.bf16.msra.mxu0 %v2254_v3  ;;  %v2265_v14 = vld [vmem:[%s3414_s1 + $0xb0] sm:$0xff]   ;;  %v2267_v16 = vld [vmem:[%s3414_s1 + $0xb8] sm:$0xff]   ;;  %v2269_v18 = vld [vmem:[%s3414_s1 + $0xc0] sm:$0xff]  }
   0x7   :  { %1475 = vmatpush1.bf16.msra.mxu1 %v2255_v4  ;;  %1187 = vmatprep.subr.bf16.mxu0 %v2476_v0  ;;  %v2286_v19 = vld [vmem:[%s3415_s0 + $0x4] ss:$16 sps:$4 sm:$0xff]   ;;  %v2270_v20 = vld [vmem:[%s3414_s1 + $0x48] sm:$0xff]   ;;  %v2274_v25 = vld [vmem:[%s3414_s1 + $0x58] sm:$0xff]  }
   0x8   :  { %1476 = vmatprep.subr.bf16.mxu1 %v2476_v0  ;;  %v2289_v21 = vld [vmem:[%s3415_s0 + $0xc] ss:$16 sps:$4 sm:$0xff]   ;;  %1215 = vmatprep.mubr.bf16.mxu0 %v2286_v19  ;;  %v2272_v23 = vld [vmem:[%s3414_s1 + $0x50] sm:$0xff]   ;;  %v2276_v27 = vld [vmem:[%s3414_s1 + $0x60] sm:$0xff]  }
   0x9   :  { %v2271_v22 = vld [vmem:[%s3414_s1 + $0xc8] sm:$0xff]   ;;  %1504 = vmatprep.mubr.bf16.mxu1 %v2289_v21  ;;  %v2273_v24 = vld [vmem:[%s3414_s1 + $0xd0] sm:$0xff]   ;;  %v2275_v26 = vld [vmem:[%s3414_s1 + $0xd8] sm:$0xff]  }
   0xa   :  { %1188 = vmatpush1.bf16.msra.mxu0 %v2256_v5  ;;  %v2277_v28 = vld [vmem:[%s3414_s1 + $0xe0] sm:$0xff]   ;;  %v2278_v29 = vld [vmem:[%s3414_s1 + $0x68] sm:$0xff]   ;;  %v2280_v31 = vld [vmem:[%s3414_s1 + $0x70] sm:$0xff]  }
   0xb   :  { %1477 = vmatpush1.bf16.msra.mxu1 %v2257_v6  ;;  %1189 = vmatprep.subr.bf16.mxu0 %v2476_v0  ;;  %v2279_v30 = vld [vmem:[%s3414_s1 + $0xe8] sm:$0xff]   ;;  %v2281_v32 = vld [vmem:[%s3414_s1 + $0xf0] sm:$0xff]   ;;  %v2282_v33 = vld [vmem:[%s3414_s1 + $0x78] sm:$0xff]  }
   0xc   :  { %1478 = vmatprep.subr.bf16.mxu1 %v2476_v0  ;;  %v2283_v34 = vld [vmem:[%s3414_s1 + $0xf8] sm:$0xff]   ;;  %v2284_v35 = vld [vmem:[%s3415_s0] ss:$16 sps:$4 sm:$0xff]   ;;  %v2290_v37 = vld [vmem:[%s3415_s0 + $0x24] ss:$16 sps:$4 sm:$0xff]  }
   0xd   :  { %v2287_v36 = vld [vmem:[%s3415_s0 + $0x8] ss:$16 sps:$4 sm:$0xff]   ;;  %v2292_v38 = vld [vmem:[%s3415_s0 + $0x2c] ss:$16 sps:$4 sm:$0xff]   ;;  %v2294_v39 = vld [vmem:[%s3415_s0 + $0x20] ss:$16 sps:$4 sm:$0xff]  }
   0xe   :  { %1190 = vmatpush1.bf16.msra.mxu0 %v2258_v7  ;;  %v2295_v40 = vld [vmem:[%s3415_s0 + $0x28] ss:$16 sps:$4 sm:$0xff]   ;;  %v2296_v41 = vld [vmem:[%s3415_s0 + $0x44] ss:$16 sps:$4 sm:$0xff]   ;;  %v2298_v42 = vld [vmem:[%s3415_s0 + $0x4c] ss:$16 sps:$4 sm:$0xff]  }
   0xf   :  { %1479 = vmatpush1.bf16.msra.mxu1 %v2259_v8  ;;  %1191 = vmatprep.subr.bf16.mxu0 %v2476_v0  ;;  %v2300_v43 = vld [vmem:[%s3415_s0 + $0x40] ss:$16 sps:$4 sm:$0xff]   ;;  %v2301_v44 = vld [vmem:[%s3415_s0 + $0x48] ss:$16 sps:$4 sm:$0xff]   ;;  %v2302_v45 = vld [vmem:[%s3415_s0 + $0x64] ss:$16 sps:$4 sm:$0xff]  }
  0x10   :  { %1480 = vmatprep.subr.bf16.mxu1 %v2476_v0  ;;  %v2304_v46 = vld [vmem:[%s3415_s0 + $0x6c] ss:$16 sps:$4 sm:$0xff]   ;;  %v2306_v47 = vld [vmem:[%s3415_s0 + $0x60] ss:$16 sps:$4 sm:$0xff]   ;;  %v2307_v48 = vld [vmem:[%s3415_s0 + $0x68] ss:$16 sps:$4 sm:$0xff]  }
  0x11   :  { %v2308_v49 = vld [vmem:[%s3415_s0 + $0x84] ss:$16 sps:$4 sm:$0xff]   ;;  %v2310_v50 = vld [vmem:[%s3415_s0 + $0x8c] ss:$16 sps:$4 sm:$0xff]   ;;  %v2312_v51 = vld [vmem:[%s3415_s0 + $0x80] ss:$16 sps:$4 sm:$0xff]  }
  0x12   :  { %1192 = vmatpush1.bf16.msra.mxu0 %v2260_v9  ;;  %v2313_v52 = vld [vmem:[%s3415_s0 + $0x88] ss:$16 sps:$4 sm:$0xff]   ;;  %v2314_v53 = vld [vmem:[%s3415_s0 + $0xa4] ss:$16 sps:$4 sm:$0xff]   ;;  %v2316_v54 = vld [vmem:[%s3415_s0 + $0xac] ss:$16 sps:$4 sm:$0xff]  }
  0x13   :  { %1481 = vmatpush1.bf16.msra.mxu1 %v2261_v10  ;;  %1193 = vmatprep.subr.bf16.mxu0 %v2476_v0  ;;  %v2318_v55 = vld [vmem:[%s3415_s0 + $0xa0] ss:$16 sps:$4 sm:$0xff]   ;;  %v2319_v56 = vld [vmem:[%s3415_s0 + $0xa8] ss:$16 sps:$4 sm:$0xff]   ;;  %v2320_v57 = vld [vmem:[%s3415_s0 + $0xc4] ss:$16 sps:$4 sm:$0xff]  }
  0x14   :  { %1482 = vmatprep.subr.bf16.mxu1 %v2476_v0  ;;  %v2322_v58 = vld [vmem:[%s3415_s0 + $0xcc] ss:$16 sps:$4 sm:$0xff]   ;;  %v2324_v59 = vld [vmem:[%s3415_s0 + $0xc0] ss:$16 sps:$4 sm:$0xff]   ;;  %v2325_v60 = vld [vmem:[%s3415_s0 + $0xc8] ss:$16 sps:$4 sm:$0xff]  }
  0x15   :  { %v2326_v61 = vld [vmem:[%s3415_s0 + $0xe4] ss:$16 sps:$4 sm:$0xff]   ;;  %v2328_v62 = vld [vmem:[%s3415_s0 + $0xec] ss:$16 sps:$4 sm:$0xff]   ;;  %v2330_v63 = vld [vmem:[%s3415_s0 + $0xe0] ss:$16 sps:$4 sm:$0xff]  }
  0x16   :  { %1194 = vmatpush1.bf16.msra.mxu0 %v2262_v11  ;;  %v2332_v1 = vld [vmem:[%s3415_s0 + $0x104] ss:$16 sps:$4 sm:$0xff]   ;;  %v2334_v2 = vld [vmem:[%s3415_s0 + $0x10c] ss:$16 sps:$4 sm:$0xff]   ;;  %v2336_v3 = vld [vmem:[%s3415_s0 + $0x100] ss:$16 sps:$4 sm:$0xff]  }
  0x17   :  { %1483 = vmatpush1.bf16.msra.mxu1 %v2263_v12  ;;  %1195 = vmatprep.subr.bf16.mxu0 %v2476_v0  ;;  %v2337_v4 = vld [vmem:[%s3415_s0 + $0x108] ss:$16 sps:$4 sm:$0xff]   ;;  %v2338_v5 = vld [vmem:[%s3415_s0 + $0x124] ss:$16 sps:$4 sm:$0xff]   ;;  %v2340_v6 = vld [vmem:[%s3415_s0 + $0x12c] ss:$16 sps:$4 sm:$0xff]  }
  0x18   :  { %1484 = vmatprep.subr.bf16.mxu1 %v2476_v0  ;;  %v2342_v7 = vld [vmem:[%s3415_s0 + $0x120] ss:$16 sps:$4 sm:$0xff]   ;;  %v2343_v8 = vld [vmem:[%s3415_s0 + $0x128] ss:$16 sps:$4 sm:$0xff]   ;;  %v2344_v9 = vld [vmem:[%s3415_s0 + $0x144] ss:$16 sps:$4 sm:$0xff]  }
  0x19   :  { %v2346_v10 = vld [vmem:[%s3415_s0 + $0x14c] ss:$16 sps:$4 sm:$0xff]   ;;  %v2348_v11 = vld [vmem:[%s3415_s0 + $0x140] ss:$16 sps:$4 sm:$0xff]   ;;  %v2349_v12 = vld [vmem:[%s3415_s0 + $0x148] ss:$16 sps:$4 sm:$0xff]  }
  0x1a   :  { %1196 = vmatpush1.bf16.msra.mxu0 %v2264_v13  ;;  %v2350_v13 = vld [vmem:[%s3415_s0 + $0x164] ss:$16 sps:$4 sm:$0xff]   ;;  %v2358_v19 = vld [vmem:[%s3415_s0 + $0x18c] ss:$16 sps:$4 sm:$0xff]   ;;  %v2361_v21 = vld [vmem:[%s3415_s0 + $0x188] ss:$16 sps:$4 sm:$0xff]  }
  0x1b   :  { %1485 = vmatpush1.bf16.msra.mxu1 %v2265_v14  ;;  %1197 = vmatprep.subr.bf16.mxu0 %v2476_v0  ;;  %v2352_v14 = vld [vmem:[%s3415_s0 + $0x16c] ss:$16 sps:$4 sm:$0xff]  }
  0x1c   :  { %1486 = vmatprep.subr.bf16.mxu1 %v2476_v0 }
  0x1e   :  { %1198 = vmatpush1.bf16.msra.mxu0 %v2266_v15  ;;  %v2354_v15 = vld [vmem:[%s3415_s0 + $0x160] ss:$16 sps:$4 sm:$0xff]  }
  0x1f   :  { %1487 = vmatpush1.bf16.msra.mxu1 %v2267_v16  ;;  %1199 = vmatprep.subr.bf16.mxu0 %v2476_v0  ;;  %v2769_v16 = vld [vmem:[%s3416_s2] ss:$0 sm:$0xff] }
  0x20   :  { %1488 = vmatprep.subr.bf16.mxu1 %v2476_v0  ;;  %66 = vst [vmem:[%s3417_s3 + $0x140] sm:$0xff] %v2769_v16  ;;  %67 = vst [vmem:[%s3417_s3 + $0x148] sm:$0xff] %v2769_v16 }
  0x21   :  { %68 = vst [vmem:[%s3417_s3 + $0x150] sm:$0xff] %v2769_v16  ;;  %69 = vst [vmem:[%s3417_s3 + $0x158] sm:$0xff] %v2769_v16 }
  0x22   :  { %1200 = vmatpush1.bf16.msra.mxu0 %v2268_v17  ;;  %v2355_v17 = vld [vmem:[%s3415_s0 + $0x168] ss:$16 sps:$4 sm:$0xff]   ;;  %70 = vst [vmem:[%s3417_s3 + $0x160] sm:$0xff] %v2769_v16  ;;  %71 = vst [vmem:[%s3417_s3 + $0x168] sm:$0xff] %v2769_v16 }
  0x23   :  { %1489 = vmatpush1.bf16.msra.mxu1 %v2269_v18  ;;  %1201 = vmatprep.subr.bf16.mxu0 %v2476_v0  ;;  %v2356_v18 = vld [vmem:[%s3415_s0 + $0x184] ss:$16 sps:$4 sm:$0xff]   ;;  %72 = vst [vmem:[%s3417_s3 + $0x170] sm:$0xff] %v2769_v16  ;;  %73 = vst [vmem:[%s3417_s3 + $0x178] sm:$0xff] %v2769_v16 }
  0x24   :  { %1490 = vmatprep.subr.bf16.mxu1 %v2476_v0  ;;  %74 = vst [vmem:[%s3417_s3 + $0x180] sm:$0xff] %v2769_v16  ;;  %75 = vst [vmem:[%s3417_s3 + $0x188] sm:$0xff] %v2769_v16 }
  0x25   :  { %76 = vst [vmem:[%s3417_s3 + $0x190] sm:$0xff] %v2769_v16  ;;  %77 = vst [vmem:[%s3417_s3 + $0x198] sm:$0xff] %v2769_v16 }
  0x26   :  { %1202 = vmatpush1.bf16.msra.mxu0 %v2270_v20  ;;  %78 = vst [vmem:[%s3417_s3 + $0x1a0] sm:$0xff] %v2769_v16  ;;  %79 = vst [vmem:[%s3417_s3 + $0x1a8] sm:$0xff] %v2769_v16  ;;  %v2360_v20 = vld [vmem:[%s3415_s0 + $0x180] ss:$16 sps:$4 sm:$0xff]  }
  0x27   :  { %1491 = vmatpush1.bf16.msra.mxu1 %v2271_v22  ;;  %1203 = vmatprep.subr.bf16.mxu0 %v2476_v0  ;;  %80 = vst [vmem:[%s3417_s3 + $0x1b0] sm:$0xff] %v2769_v16  ;;  %81 = vst [vmem:[%s3417_s3 + $0x1b8] sm:$0xff] %v2769_v16  ;;  %v2362_v22 = vld [vmem:[%s3415_s0 + $0x1a4] ss:$16 sps:$4 sm:$0xff]  }
  0x28   :  { %1492 = vmatprep.subr.bf16.mxu1 %v2476_v0  ;;  %82 = vst [vmem:[%s3417_s3 + $0x1c0] sm:$0xff] %v2769_v16  ;;  %83 = vst [vmem:[%s3417_s3 + $0x1c8] sm:$0xff] %v2769_v16 }
  0x29   :  { %84 = vst [vmem:[%s3417_s3 + $0x1d0] sm:$0xff] %v2769_v16  ;;  %85 = vst [vmem:[%s3417_s3 + $0x1d8] sm:$0xff] %v2769_v16 }
  0x2a   :  { %1204 = vmatpush1.bf16.msra.mxu0 %v2272_v23  ;;  %86 = vst [vmem:[%s3417_s3 + $0x1e0] sm:$0xff] %v2769_v16  ;;  %87 = vst [vmem:[%s3417_s3 + $0x1e8] sm:$0xff] %v2769_v16  ;;  %v2364_v23 = vld [vmem:[%s3415_s0 + $0x1ac] ss:$16 sps:$4 sm:$0xff]  }
  0x2b   :  { %1493 = vmatpush1.bf16.msra.mxu1 %v2273_v24  ;;  %1205 = vmatprep.subr.bf16.mxu0 %v2476_v0  ;;  %88 = vst [vmem:[%s3417_s3 + $0x1f0] sm:$0xff] %v2769_v16  ;;  %89 = vst [vmem:[%s3417_s3 + $0x1f8] sm:$0xff] %v2769_v16  ;;  %v2366_v24 = vld [vmem:[%s3415_s0 + $0x1a0] ss:$16 sps:$4 sm:$0xff]  }
  0x2c   :  { %1494 = vmatprep.subr.bf16.mxu1 %v2476_v0 }
  0x2e   :  { %1206 = vmatpush1.bf16.msra.mxu0 %v2274_v25  ;;  %v2367_v25 = vld [vmem:[%s3415_s0 + $0x1a8] ss:$16 sps:$4 sm:$0xff]  }
  0x2f   :  { %1495 = vmatpush1.bf16.msra.mxu1 %v2275_v26  ;;  %1207 = vmatprep.subr.bf16.mxu0 %v2476_v0  ;;  %v2368_v26 = vld [vmem:[%s3415_s0 + $0x1c4] ss:$16 sps:$4 sm:$0xff]  }
  0x30   :  { %1496 = vmatprep.subr.bf16.mxu1 %v2476_v0 }
  0x32   :  { %1208 = vmatpush1.bf16.msra.mxu0 %v2276_v27  ;;  %v2370_v27 = vld [vmem:[%s3415_s0 + $0x1cc] ss:$16 sps:$4 sm:$0xff]  }
  0x33   :  { %1497 = vmatpush1.bf16.msra.mxu1 %v2277_v28  ;;  %1209 = vmatprep.subr.bf16.mxu0 %v2476_v0  ;;  %v2372_v28 = vld [vmem:[%s3415_s0 + $0x1c0] ss:$16 sps:$4 sm:$0xff]  }
  0x34   :  { %1498 = vmatprep.subr.bf16.mxu1 %v2476_v0 }
  0x36   :  { %1210 = vmatpush1.bf16.msra.mxu0 %v2278_v29  ;;  %v2373_v29 = vld [vmem:[%s3415_s0 + $0x1c8] ss:$16 sps:$4 sm:$0xff]  }
  0x37   :  { %1499 = vmatpush1.bf16.msra.mxu1 %v2279_v30  ;;  %1211 = vmatprep.subr.bf16.mxu0 %v2476_v0  ;;  %v2374_v30 = vld [vmem:[%s3415_s0 + $0x1e4] ss:$16 sps:$4 sm:$0xff]  }
  0x38   :  { %1500 = vmatprep.subr.bf16.mxu1 %v2476_v0 }
  0x3a   :  { %1212 = vmatpush1.bf16.msra.mxu0 %v2280_v31  ;;  %v2376_v31 = vld [vmem:[%s3415_s0 + $0x1ec] ss:$16 sps:$4 sm:$0xff]  }
  0x3b   :  { %1501 = vmatpush1.bf16.msra.mxu1 %v2281_v32  ;;  %1213 = vmatprep.subr.bf16.mxu0 %v2476_v0  ;;  %v2378_v32 = vld [vmem:[%s3415_s0 + $0x1e0] ss:$16 sps:$4 sm:$0xff]  }
  0x3c   :  { %1502 = vmatprep.subr.bf16.mxu1 %v2476_v0  ;;  %v2331_v0 = vld [vmem:[%s3415_s0 + $0xe8] ss:$16 sps:$4 sm:$0xff]  }
  0x3e   :  { %1214 = vmatpush1.bf16.msra.mxu0 %v2282_v33  ;;  %v2379_v33 = vld [vmem:[%s3415_s0 + $0x1e8] ss:$16 sps:$4 sm:$0xff]  }
  0x3f   :  { %1503 = vmatpush1.bf16.msra.mxu1 %v2283_v34  ;;  %v2380_v34 = vld [vmem:[%s3415_s0 + $0x204] ss:$16 sps:$4 sm:$0xff]  }
  0x41   :  { %1216 = vmatmul.mubr.bf16.vlgmr.msra.gmra.mrb[0].mxu0 %v2284_v35  ;;  %v2382_v35 = vld [vmem:[%s3415_s0 + $0x20c] ss:$16 sps:$4 sm:$0xff]  }
  0x42   :  { %1505 = vmatmul.mubr.bf16.vlgmr.msra.gmra.mrb[0].mxu1 %v2287_v36  ;;  %1223 = vmatprep.mubr.bf16.mxu0 %v2290_v37  ;;  %v2384_v36 = vld [vmem:[%s3415_s0 + $0x200] ss:$16 sps:$4 sm:$0xff]   ;;  %v2385_v37 = vld [vmem:[%s3415_s0 + $0x208] ss:$16 sps:$4 sm:$0xff]  }
  0x43   :  { %1512 = vmatprep.mubr.bf16.mxu1 %v2292_v38  ;;  %v2386_v38 = vld [vmem:[%s3415_s0 + $0x224] ss:$16 sps:$4 sm:$0xff]  }
  0x49   :  { %1224 = vmatmul.mubr.bf16.gmra.mrb[4].mxu0 %v2294_v39  ;;  %v2388_v39 = vld [vmem:[%s3415_s0 + $0x22c] ss:$16 sps:$4 sm:$0xff]  }
  0x4a   :  { %1513 = vmatmul.mubr.bf16.gmra.mrb[4].mxu1 %v2295_v40  ;;  %1231 = vmatprep.mubr.bf16.mxu0 %v2296_v41  ;;  %v2390_v40 = vld [vmem:[%s3415_s0 + $0x220] ss:$16 sps:$4 sm:$0xff]   ;;  %v2391_v41 = vld [vmem:[%s3415_s0 + $0x228] ss:$16 sps:$4 sm:$0xff]  }
  0x4b   :  { %1520 = vmatprep.mubr.bf16.mxu1 %v2298_v42  ;;  %v2392_v42 = vld [vmem:[%s3415_s0 + $0x244] ss:$16 sps:$4 sm:$0xff]  }
  0x51   :  { %1232 = vmatmul.mubr.bf16.gmra.mrb[8].mxu0 %v2300_v43  ;;  %v2394_v43 = vld [vmem:[%s3415_s0 + $0x24c] ss:$16 sps:$4 sm:$0xff]  }
  0x52   :  { %1521 = vmatmul.mubr.bf16.gmra.mrb[8].mxu1 %v2301_v44  ;;  %1239 = vmatprep.mubr.bf16.mxu0 %v2302_v45  ;;  %v2396_v44 = vld [vmem:[%s3415_s0 + $0x240] ss:$16 sps:$4 sm:$0xff]   ;;  %v2397_v45 = vld [vmem:[%s3415_s0 + $0x248] ss:$16 sps:$4 sm:$0xff]  }
  0x53   :  { %1528 = vmatprep.mubr.bf16.mxu1 %v2304_v46  ;;  %v2398_v46 = vld [vmem:[%s3415_s0 + $0x264] ss:$16 sps:$4 sm:$0xff]  }
  0x59   :  { %1240 = vmatmul.mubr.bf16.gmra.mrb[12].mxu0 %v2306_v47  ;;  %v2400_v47 = vld [vmem:[%s3415_s0 + $0x26c] ss:$16 sps:$4 sm:$0xff]  }
  0x5a   :  { %1529 = vmatmul.mubr.bf16.gmra.mrb[12].mxu1 %v2307_v48  ;;  %1247 = vmatprep.mubr.bf16.mxu0 %v2308_v49  ;;  %v2402_v48 = vld [vmem:[%s3415_s0 + $0x260] ss:$16 sps:$4 sm:$0xff]   ;;  %v2403_v49 = vld [vmem:[%s3415_s0 + $0x268] ss:$16 sps:$4 sm:$0xff]  }
  0x5b   :  { %1536 = vmatprep.mubr.bf16.mxu1 %v2310_v50  ;;  %v2404_v50 = vld [vmem:[%s3415_s0 + $0x284] ss:$16 sps:$4 sm:$0xff]  }
  0x61   :  { %1248 = vmatmul.mubr.bf16.gmra.mrb[16].mxu0 %v2312_v51  ;;  %v2406_v51 = vld [vmem:[%s3415_s0 + $0x28c] ss:$16 sps:$4 sm:$0xff]  }
  0x62   :  { %1537 = vmatmul.mubr.bf16.gmra.mrb[16].mxu1 %v2313_v52  ;;  %1255 = vmatprep.mubr.bf16.mxu0 %v2314_v53  ;;  %v2408_v52 = vld [vmem:[%s3415_s0 + $0x280] ss:$16 sps:$4 sm:$0xff]   ;;  %v2409_v53 = vld [vmem:[%s3415_s0 + $0x288] ss:$16 sps:$4 sm:$0xff]  }
  0x63   :  { %1544 = vmatprep.mubr.bf16.mxu1 %v2316_v54  ;;  %v2410_v54 = vld [vmem:[%s3415_s0 + $0x2a4] ss:$16 sps:$4 sm:$0xff]  }
  0x69   :  { %1256 = vmatmul.mubr.bf16.gmra.mrb[20].mxu0 %v2318_v55  ;;  %v2412_v55 = vld [vmem:[%s3415_s0 + $0x2ac] ss:$16 sps:$4 sm:$0xff]  }
  0x6a   :  { %1545 = vmatmul.mubr.bf16.gmra.mrb[20].mxu1 %v2319_v56  ;;  %1263 = vmatprep.mubr.bf16.mxu0 %v2320_v57  ;;  %v2414_v56 = vld [vmem:[%s3415_s0 + $0x2a0] ss:$16 sps:$4 sm:$0xff]   ;;  %v2415_v57 = vld [vmem:[%s3415_s0 + $0x2a8] ss:$16 sps:$4 sm:$0xff]  }
  0x6b   :  { %1552 = vmatprep.mubr.bf16.mxu1 %v2322_v58  ;;  %v2416_v58 = vld [vmem:[%s3415_s0 + $0x2c4] ss:$16 sps:$4 sm:$0xff]  }
  0x71   :  { %1264 = vmatmul.mubr.bf16.gmra.mrb[24].mxu0 %v2324_v59  ;;  %v2418_v59 = vld [vmem:[%s3415_s0 + $0x2cc] ss:$16 sps:$4 sm:$0xff]  }
  0x72   :  { %1553 = vmatmul.mubr.bf16.gmra.mrb[24].mxu1 %v2325_v60  ;;  %1271 = vmatprep.mubr.bf16.mxu0 %v2326_v61  ;;  %v2420_v60 = vld [vmem:[%s3415_s0 + $0x2c0] ss:$16 sps:$4 sm:$0xff]   ;;  %v2421_v61 = vld [vmem:[%s3415_s0 + $0x2c8] ss:$16 sps:$4 sm:$0xff]  }
  0x73   :  { %1560 = vmatprep.mubr.bf16.mxu1 %v2328_v62  ;;  %v2422_v62 = vld [vmem:[%s3415_s0 + $0x2e4] ss:$16 sps:$4 sm:$0xff]  }
  0x79   :  { %1272 = vmatmul.mubr.bf16.gmra.mrb[28].mxu0 %v2330_v63  ;;  %v2424_v63 = vld [vmem:[%s3415_s0 + $0x2ec] ss:$16 sps:$4 sm:$0xff]  }
  0x7a   :  { %1561 = vmatmul.mubr.bf16.gmra.mrb[28].mxu1 %v2331_v0  ;;  %1279 = vmatprep.mubr.bf16.mxu0 %v2332_v1  ;;  %v2426_v0 = vld [vmem:[%s3415_s0 + $0x2e0] ss:$16 sps:$4 sm:$0xff]   ;;  %v2427_v1 = vld [vmem:[%s3415_s0 + $0x2e8] ss:$16 sps:$4 sm:$0xff]  }
  0x7b   :  { %1568 = vmatprep.mubr.bf16.mxu1 %v2334_v2  ;;  %v2428_v2 = vld [vmem:[%s3415_s0 + $0x304] ss:$16 sps:$4 sm:$0xff]  }
  0x81   :  { %1280 = vmatmul.mubr.bf16.gmra.mrb[32].mxu0 %v2336_v3  ;;  %v2430_v3 = vld [vmem:[%s3415_s0 + $0x30c] ss:$16 sps:$4 sm:$0xff]  }
  0x82   :  { %1569 = vmatmul.mubr.bf16.gmra.mrb[32].mxu1 %v2337_v4  ;;  %1287 = vmatprep.mubr.bf16.mxu0 %v2338_v5  ;;  %v2432_v4 = vld [vmem:[%s3415_s0 + $0x300] ss:$16 sps:$4 sm:$0xff]   ;;  %v2433_v5 = vld [vmem:[%s3415_s0 + $0x308] ss:$16 sps:$4 sm:$0xff]  }
  0x83   :  { %1576 = vmatprep.mubr.bf16.mxu1 %v2340_v6  ;;  %v2434_v6 = vld [vmem:[%s3415_s0 + $0x324] ss:$16 sps:$4 sm:$0xff]  }
  0x89   :  { %1288 = vmatmul.mubr.bf16.gmra.mrb[36].mxu0 %v2342_v7  ;;  %v2436_v7 = vld [vmem:[%s3415_s0 + $0x32c] ss:$16 sps:$4 sm:$0xff]  }
  0x8a   :  { %1577 = vmatmul.mubr.bf16.gmra.mrb[36].mxu1 %v2343_v8  ;;  %1295 = vmatprep.mubr.bf16.mxu0 %v2344_v9  ;;  %v2438_v8 = vld [vmem:[%s3415_s0 + $0x320] ss:$16 sps:$4 sm:$0xff]   ;;  %v2439_v9 = vld [vmem:[%s3415_s0 + $0x328] ss:$16 sps:$4 sm:$0xff]  }
  0x8b   :  { %1584 = vmatprep.mubr.bf16.mxu1 %v2346_v10  ;;  %v2440_v10 = vld [vmem:[%s3415_s0 + $0x344] ss:$16 sps:$4 sm:$0xff]  }
  0x91   :  { %1296 = vmatmul.mubr.bf16.gmra.mrb[40].mxu0 %v2348_v11  ;;  %v2442_v11 = vld [vmem:[%s3415_s0 + $0x34c] ss:$16 sps:$4 sm:$0xff]  }
  0x92   :  { %1585 = vmatmul.mubr.bf16.gmra.mrb[40].mxu1 %v2349_v12  ;;  %1303 = vmatprep.mubr.bf16.mxu0 %v2350_v13  ;;  %v2444_v12 = vld [vmem:[%s3415_s0 + $0x340] ss:$16 sps:$4 sm:$0xff]   ;;  %v2445_v13 = vld [vmem:[%s3415_s0 + $0x348] ss:$16 sps:$4 sm:$0xff]  }
  0x93   :  { %1592 = vmatprep.mubr.bf16.mxu1 %v2352_v14  ;;  %v2446_v14 = vld [vmem:[%s3415_s0 + $0x364] ss:$16 sps:$4 sm:$0xff]  }
  0x99   :  { %1304 = vmatmul.mubr.bf16.gmra.mrb[44].mxu0 %v2354_v15  ;;  %v2448_v15 = vld [vmem:[%s3415_s0 + $0x36c] ss:$16 sps:$4 sm:$0xff]  }
  0x9a   :  { %1593 = vmatmul.mubr.bf16.gmra.mrb[44].mxu1 %v2355_v17  ;;  %1311 = vmatprep.mubr.bf16.mxu0 %v2356_v18 }
  0x9b   :  { %1600 = vmatprep.mubr.bf16.mxu1 %v2358_v19 }
  0xa1   :  { %1312 = vmatmul.mubr.bf16.gmra.mrb[48].mxu0 %v2360_v20  ;;  %v2450_v20 = vld [vmem:[%s3415_s0 + $0x360] ss:$16 sps:$4 sm:$0xff]  }
  0xa2   :  { %1601 = vmatmul.mubr.bf16.gmra.mrb[48].mxu1 %v2361_v21  ;;  %1319 = vmatprep.mubr.bf16.mxu0 %v2362_v22 }
  0xa3   :  { %1608 = vmatprep.mubr.bf16.mxu1 %v2364_v23 }
  0xa9   :  { %1320 = vmatmul.mubr.bf16.gmra.mrb[52].mxu0 %v2366_v24  ;;  %v2451_v24 = vld [vmem:[%s3415_s0 + $0x368] ss:$16 sps:$4 sm:$0xff]  }
  0xaa   :  { %1609 = vmatmul.mubr.bf16.gmra.mrb[52].mxu1 %v2367_v25  ;;  %1327 = vmatprep.mubr.bf16.mxu0 %v2368_v26  ;;  %v2452_v25 = vld [vmem:[%s3415_s0 + $0x384] ss:$16 sps:$4 sm:$0xff]  }
  0xab   :  { %1616 = vmatprep.mubr.bf16.mxu1 %v2370_v27 }
  0xb1   :  { %1328 = vmatmul.mubr.bf16.gmra.mrb[56].mxu0 %v2372_v28  ;;  %v2454_v28 = vld [vmem:[%s3415_s0 + $0x38c] ss:$16 sps:$4 sm:$0xff]  }
  0xb2   :  { %1617 = vmatmul.mubr.bf16.gmra.mrb[56].mxu1 %v2373_v29  ;;  %1335 = vmatprep.mubr.bf16.mxu0 %v2374_v30 }
  0xb3   :  { %1624 = vmatprep.mubr.bf16.mxu1 %v2376_v31 }
  0xb9   :  { %1336 = vmatmul.mubr.bf16.gmra.mrb[60].mxu0 %v2378_v32 }
  0xba   :  { %1625 = vmatmul.mubr.bf16.gmra.mrb[60].mxu1 %v2379_v33  ;;  %1343 = vmatprep.mubr.bf16.mxu0 %v2380_v34 }
  0xbb   :  { %1632 = vmatprep.mubr.bf16.mxu1 %v2382_v35 }
  0xc1   :  { %1344 = vmatmul.mubr.bf16.gmra.mrb[64].mxu0 %v2384_v36 }
  0xc2   :  { %1633 = vmatmul.mubr.bf16.gmra.mrb[64].mxu1 %v2385_v37  ;;  %1351 = vmatprep.mubr.bf16.mxu0 %v2386_v38  ;;  %v2456_v38 = vld [vmem:[%s3415_s0 + $0x380] ss:$16 sps:$4 sm:$0xff]  }
  0xc3   :  { %1640 = vmatprep.mubr.bf16.mxu1 %v2388_v39 }
  0xc9   :  { %1352 = vmatmul.mubr.bf16.gmra.mrb[68].mxu0 %v2390_v40 }
  0xca   :  { %1641 = vmatmul.mubr.bf16.gmra.mrb[68].mxu1 %v2391_v41  ;;  %1359 = vmatprep.mubr.bf16.mxu0 %v2392_v42  ;;  %v2457_v42 = vld [vmem:[%s3415_s0 + $0x388] ss:$16 sps:$4 sm:$0xff]  }
  0xcb   :  { %1648 = vmatprep.mubr.bf16.mxu1 %v2394_v43  ;;  %v2458_v43 = vld [vmem:[%s3415_s0 + $0x3a4] ss:$16 sps:$4 sm:$0xff]  }
  0xd1   :  { %1360 = vmatmul.mubr.bf16.gmra.mrb[72].mxu0 %v2396_v44 }
  0xd2   :  { %1649 = vmatmul.mubr.bf16.gmra.mrb[72].mxu1 %v2397_v45  ;;  %1367 = vmatprep.mubr.bf16.mxu0 %v2398_v46  ;;  %v2460_v46 = vld [vmem:[%s3415_s0 + $0x3ac] ss:$16 sps:$4 sm:$0xff]  }
  0xd3   :  { %1656 = vmatprep.mubr.bf16.mxu1 %v2400_v47 }
  0xd9   :  { %1368 = vmatmul.mubr.bf16.gmra.mrb[76].mxu0 %v2402_v48 }
  0xda   :  { %1657 = vmatmul.mubr.bf16.gmra.mrb[76].mxu1 %v2403_v49  ;;  %1375 = vmatprep.mubr.bf16.mxu0 %v2404_v50 }
  0xdb   :  { %1664 = vmatprep.mubr.bf16.mxu1 %v2406_v51 }
  0xe1   :  { %1376 = vmatmul.mubr.bf16.gmra.mrb[80].mxu0 %v2408_v52 }
  0xe2   :  { %1665 = vmatmul.mubr.bf16.gmra.mrb[80].mxu1 %v2409_v53  ;;  %1383 = vmatprep.mubr.bf16.mxu0 %v2410_v54 }
  0xe3   :  { %1672 = vmatprep.mubr.bf16.mxu1 %v2412_v55 }
  0xe9   :  { %1384 = vmatmul.mubr.bf16.gmra.mrb[84].mxu0 %v2414_v56  ;;  %v2462_v56 = vld [vmem:[%s3415_s0 + $0x3a0] ss:$16 sps:$4 sm:$0xff]  }
  0xea   :  { %1673 = vmatmul.mubr.bf16.gmra.mrb[84].mxu1 %v2415_v57  ;;  %1391 = vmatprep.mubr.bf16.mxu0 %v2416_v58 }
  0xeb   :  { %1680 = vmatprep.mubr.bf16.mxu1 %v2418_v59 }
  0xf1   :  { %1392 = vmatmul.mubr.bf16.gmra.mrb[88].mxu0 %v2420_v60  ;;  %v2463_v60 = vld [vmem:[%s3415_s0 + $0x3a8] ss:$16 sps:$4 sm:$0xff]  }
  0xf2   :  { %1681 = vmatmul.mubr.bf16.gmra.mrb[88].mxu1 %v2421_v61  ;;  %1399 = vmatprep.mubr.bf16.mxu0 %v2422_v62  ;;  %v2464_v61 = vld [vmem:[%s3415_s0 + $0x3c4] ss:$16 sps:$4 sm:$0xff]  }
  0xf3   :  { %1688 = vmatprep.mubr.bf16.mxu1 %v2424_v63 }
  0xf9   :  { %1400 = vmatmul.mubr.bf16.gmra.mrb[92].mxu0 %v2426_v0  ;;  %v2466_v0 = vld [vmem:[%s3415_s0 + $0x3cc] ss:$16 sps:$4 sm:$0xff]  }
  0xfa   :  { %1689 = vmatmul.mubr.bf16.gmra.mrb[92].mxu1 %v2427_v1  ;;  %1407 = vmatprep.mubr.bf16.mxu0 %v2428_v2 }
  0xfb   :  { %1696 = vmatprep.mubr.bf16.mxu1 %v2430_v3 }
 0x101   :  { %1408 = vmatmul.mubr.bf16.gmra.mrb[96].mxu0 %v2432_v4 }
 0x102   :  { %1697 = vmatmul.mubr.bf16.gmra.mrb[96].mxu1 %v2433_v5  ;;  %1415 = vmatprep.mubr.bf16.mxu0 %v2434_v6 }
 0x103   :  { %1704 = vmatprep.mubr.bf16.mxu1 %v2436_v7 }
 0x109   :  { %1416 = vmatmul.mubr.bf16.gmra.mrb[100].mxu0 %v2438_v8 }
 0x10a   :  { %1705 = vmatmul.mubr.bf16.gmra.mrb[100].mxu1 %v2439_v9  ;;  %1423 = vmatprep.mubr.bf16.mxu0 %v2440_v10  ;;  %v2468_v10 = vld [vmem:[%s3415_s0 + $0x3c0] ss:$16 sps:$4 sm:$0xff]  }
 0x10b   :  { %1712 = vmatprep.mubr.bf16.mxu1 %v2442_v11 }
 0x111   :  { %1424 = vmatmul.mubr.bf16.gmra.mrb[104].mxu0 %v2444_v12 }
 0x112   :  { %1713 = vmatmul.mubr.bf16.gmra.mrb[104].mxu1 %v2445_v13  ;;  %1431 = vmatprep.mubr.bf16.mxu0 %v2446_v14  ;;  %v2469_v14 = vld [vmem:[%s3415_s0 + $0x3c8] ss:$16 sps:$4 sm:$0xff]  }
 0x113   :  { %1720 = vmatprep.mubr.bf16.mxu1 %v2448_v15  ;;  %v2470_v15 = vld [vmem:[%s3415_s0 + $0x3e4] ss:$16 sps:$4 sm:$0xff]  }
 0x114   :  { %v1217_v17 = vpop.f32.mrb[0].mxu0 }
 0x115   :  { %v1506_v18 = vpop.f32.mrb[0].mxu1  ;;  %v1219_v19 = vpop.f32.mrb[1].mxu0 }
 0x116   :  { %v1507_v21 = vadd.f32 %v1506_v18, %v1217_v17  ;;  %v1508_v22 = vpop.f32.mrb[1].mxu1  ;;  %v1220_v23 = vpop.f32.mrb[2].mxu0  ;;  %v2472_v19 = vld [vmem:[%s3415_s0 + $0x3ec] ss:$16 sps:$4 sm:$0xff]  }
 0x117   :  { %v1509_v26 = vpop.f32.mrb[2].mxu1  ;;  %v1222_v27 = vpop.f32.mrb[3].mxu0 }
 0x118   :  { %v1761_v29 = vadd.f32 %v2769_v16, %v1507_v21  ;;  %v1510_v30 = vadd.f32 %v1509_v26, %v1220_v23  ;;  %v1511_v31 = vpop.f32.mrb[3].mxu1 }
 0x119   :  { %1432 = vmatmul.mubr.bf16.gmra.mrb[108].mxu0 %v2450_v20 }
 0x11a   :  { %v1956_v32 = vmax.f32 %v1761_v29, 0.0  ;;  %v1762_v33 = vadd.f32 %v2769_v16, %v1510_v30  ;;  %1721 = vmatmul.mubr.bf16.gmra.mrb[108].mxu1 %v2451_v24  ;;  %1439 = vmatprep.mubr.bf16.mxu0 %v2452_v25  ;;  %v2474_v29 = vld [vmem:[%s3415_s0 + $0x3e0] ss:$16 sps:$4 sm:$0xff]  }
 0x11b   :  { %1728 = vmatprep.mubr.bf16.mxu1 %v2454_v28 }
 0x11c   :  { %2020 = vst [vmem:[%s3417_s3] sm:$0xff] %v1956_v32  ;;  %v1957_v34 = vmax.f32 %v1762_v33, 0.0  ;;  %v1225_v35 = vpop.f32.mrb[4].mxu0  ;;  %v2475_v33 = vld [vmem:[%s3415_s0 + $0x3e8] ss:$16 sps:$4 sm:$0xff]  }
 0x11d   :  { %v1514_v36 = vpop.f32.mrb[4].mxu1  ;;  %v1227_v37 = vpop.f32.mrb[5].mxu0 }
 0x11e   :  { %2021 = vst [vmem:[%s3417_s3 + $0x8] sm:$0xff] %v1957_v34  ;;  %v1515_v39 = vadd.f32 %v1514_v36, %v1225_v35  ;;  %v1516_v40 = vpop.f32.mrb[5].mxu1  ;;  %v1228_v41 = vpop.f32.mrb[6].mxu0 }
 0x11f   :  { %v1517_v44 = vpop.f32.mrb[6].mxu1  ;;  %v1230_v45 = vpop.f32.mrb[7].mxu0 }
 0x120   :  { %v1763_v47 = vadd.f32 %v2769_v16, %v1515_v39  ;;  %v1518_v48 = vadd.f32 %v1517_v44, %v1228_v41  ;;  %v1519_v49 = vpop.f32.mrb[7].mxu1 }
 0x121   :  { %1440 = vmatmul.mubr.bf16.gmra.mrb[112].mxu0 %v2456_v38 }
 0x122   :  { %v1958_v50 = vmax.f32 %v1763_v47, 0.0  ;;  %v1764_v51 = vadd.f32 %v2769_v16, %v1518_v48  ;;  %1729 = vmatmul.mubr.bf16.gmra.mrb[112].mxu1 %v2457_v42  ;;  %1447 = vmatprep.mubr.bf16.mxu0 %v2458_v43 }
 0x123   :  { %1736 = vmatprep.mubr.bf16.mxu1 %v2460_v46 }
 0x124   :  { %2022 = vst [vmem:[%s3417_s3 + $0x10] sm:$0xff] %v1958_v50  ;;  %v1959_v52 = vmax.f32 %v1764_v51, 0.0  ;;  %v1233_v53 = vpop.f32.mrb[8].mxu0 }
 0x125   :  { %v1522_v54 = vpop.f32.mrb[8].mxu1  ;;  %v1235_v55 = vpop.f32.mrb[9].mxu0 }
 0x126   :  { %2023 = vst [vmem:[%s3417_s3 + $0x18] sm:$0xff] %v1959_v52  ;;  %v1523_v57 = vadd.f32 %v1522_v54, %v1233_v53  ;;  %v1524_v58 = vpop.f32.mrb[9].mxu1  ;;  %v1236_v59 = vpop.f32.mrb[10].mxu0 }
 0x127   :  { %v1525_v62 = vpop.f32.mrb[10].mxu1  ;;  %v1238_v63 = vpop.f32.mrb[11].mxu0 }
 0x128   :  { %v1765_v1 = vadd.f32 %v2769_v16, %v1523_v57  ;;  %v1526_v2 = vadd.f32 %v1525_v62, %v1236_v59  ;;  %v1527_v3 = vpop.f32.mrb[11].mxu1 }
 0x129   :  { %1448 = vmatmul.mubr.bf16.gmra.mrb[116].mxu0 %v2462_v56 }
 0x12a   :  { %v1960_v4 = vmax.f32 %v1765_v1, 0.0  ;;  %v1766_v5 = vadd.f32 %v2769_v16, %v1526_v2  ;;  %1737 = vmatmul.mubr.bf16.gmra.mrb[116].mxu1 %v2463_v60  ;;  %1455 = vmatprep.mubr.bf16.mxu0 %v2464_v61 }
 0x12b   :  { %1744 = vmatprep.mubr.bf16.mxu1 %v2466_v0 }
 0x12c   :  { %2024 = vst [vmem:[%s3417_s3 + $0x20] sm:$0xff] %v1960_v4  ;;  %v1961_v6 = vmax.f32 %v1766_v5, 0.0  ;;  %v1241_v7 = vpop.f32.mrb[12].mxu0 }
 0x12d   :  { %v1530_v8 = vpop.f32.mrb[12].mxu1  ;;  %v1243_v9 = vpop.f32.mrb[13].mxu0 }
 0x12e   :  { %2025 = vst [vmem:[%s3417_s3 + $0x28] sm:$0xff] %v1961_v6  ;;  %v1531_v11 = vadd.f32 %v1530_v8, %v1241_v7  ;;  %v1532_v12 = vpop.f32.mrb[13].mxu1  ;;  %v1244_v13 = vpop.f32.mrb[14].mxu0 }
 0x12f   :  { %v1533_v17 = vpop.f32.mrb[14].mxu1  ;;  %v1246_v18 = vpop.f32.mrb[15].mxu0 }
 0x130   :  { %v1767_v20 = vadd.f32 %v2769_v16, %v1531_v11  ;;  %v1534_v21 = vadd.f32 %v1533_v17, %v1244_v13  ;;  %v1535_v22 = vpop.f32.mrb[15].mxu1 }
 0x131   :  { %1456 = vmatmul.mubr.bf16.gmra.mrb[120].mxu0 %v2468_v10 }
 0x132   :  { %v1962_v23 = vmax.f32 %v1767_v20, 0.0  ;;  %v1768_v24 = vadd.f32 %v2769_v16, %v1534_v21  ;;  %1745 = vmatmul.mubr.bf16.gmra.mrb[120].mxu1 %v2469_v14  ;;  %1463 = vmatprep.mubr.bf16.mxu0 %v2470_v15 }
 0x133   :  { %1752 = vmatprep.mubr.bf16.mxu1 %v2472_v19 }
 0x134   :  { %2026 = vst [vmem:[%s3417_s3 + $0x30] sm:$0xff] %v1962_v23  ;;  %v1963_v25 = vmax.f32 %v1768_v24, 0.0  ;;  %v1249_v26 = vpop.f32.mrb[16].mxu0 }
 0x135   :  { %v1538_v27 = vpop.f32.mrb[16].mxu1  ;;  %v1251_v28 = vpop.f32.mrb[17].mxu0 }
 0x136   :  { %2027 = vst [vmem:[%s3417_s3 + $0x38] sm:$0xff] %v1963_v25  ;;  %v1539_v30 = vadd.f32 %v1538_v27, %v1249_v26  ;;  %v1540_v31 = vpop.f32.mrb[17].mxu1  ;;  %v1252_v32 = vpop.f32.mrb[18].mxu0 }
 0x137   :  { %v1541_v34 = vpop.f32.mrb[18].mxu1  ;;  %v1254_v35 = vpop.f32.mrb[19].mxu0 }
 0x138   :  { %v1769_v36 = vadd.f32 %v2769_v16, %v1539_v30  ;;  %v1542_v37 = vadd.f32 %v1541_v34, %v1252_v32  ;;  %v1543_v38 = vpop.f32.mrb[19].mxu1 }
 0x139   :  { %1464 = vmatmul.mubr.bf16.gmra.mrb[124].mxu0 %v2474_v29 }
 0x13a   :  { %v1964_v39 = vmax.f32 %v1769_v36, 0.0  ;;  %v1770_v40 = vadd.f32 %v2769_v16, %v1542_v37  ;;  %1753 = vmatmul.mubr.bf16.gmra.mrb[124].mxu1 %v2475_v33 }
 0x13c   :  { %2028 = vst [vmem:[%s3417_s3 + $0x40] sm:$0xff] %v1964_v39  ;;  %v1965_v41 = vmax.f32 %v1770_v40, 0.0  ;;  %v1257_v42 = vpop.f32.mrb[20].mxu0 }
 0x13d   :  { %v1546_v43 = vpop.f32.mrb[20].mxu1  ;;  %v1259_v44 = vpop.f32.mrb[21].mxu0 }
 0x13e   :  { %2029 = vst [vmem:[%s3417_s3 + $0x48] sm:$0xff] %v1965_v41  ;;  %v1547_v45 = vadd.f32 %v1546_v43, %v1257_v42  ;;  %v1548_v46 = vpop.f32.mrb[21].mxu1  ;;  %v1260_v47 = vpop.f32.mrb[22].mxu0 }
 0x13f   :  { %v1549_v48 = vpop.f32.mrb[22].mxu1  ;;  %v1262_v49 = vpop.f32.mrb[23].mxu0 }
 0x140   :  { %v1771_v50 = vadd.f32 %v2769_v16, %v1547_v45  ;;  %v1550_v51 = vadd.f32 %v1549_v48, %v1260_v47  ;;  %v1551_v52 = vpop.f32.mrb[23].mxu1 }
 0x142   :  { %v1966_v53 = vmax.f32 %v1771_v50, 0.0  ;;  %v1772_v54 = vadd.f32 %v2769_v16, %v1550_v51 }
 0x144   :  { %2030 = vst [vmem:[%s3417_s3 + $0x50] sm:$0xff] %v1966_v53  ;;  %v1967_v55 = vmax.f32 %v1772_v54, 0.0  ;;  %v1265_v56 = vpop.f32.mrb[24].mxu0 }
 0x145   :  { %v1554_v57 = vpop.f32.mrb[24].mxu1  ;;  %v1267_v58 = vpop.f32.mrb[25].mxu0 }
 0x146   :  { %2031 = vst [vmem:[%s3417_s3 + $0x58] sm:$0xff] %v1967_v55  ;;  %v1555_v59 = vadd.f32 %v1554_v57, %v1265_v56  ;;  %v1556_v60 = vpop.f32.mrb[25].mxu1  ;;  %v1268_v61 = vpop.f32.mrb[26].mxu0 }
 0x147   :  { %v1557_v62 = vpop.f32.mrb[26].mxu1  ;;  %v1270_v63 = vpop.f32.mrb[27].mxu0 }
 0x148   :  { %v1773_v0 = vadd.f32 %v2769_v16, %v1555_v59  ;;  %v1558_v1 = vadd.f32 %v1557_v62, %v1268_v61  ;;  %v1559_v2 = vpop.f32.mrb[27].mxu1 }
 0x14a   :  { %v1968_v3 = vmax.f32 %v1773_v0, 0.0  ;;  %v1774_v4 = vadd.f32 %v2769_v16, %v1558_v1 }
 0x14c   :  { %2032 = vst [vmem:[%s3417_s3 + $0x60] sm:$0xff] %v1968_v3  ;;  %v1969_v5 = vmax.f32 %v1774_v4, 0.0  ;;  %v1273_v6 = vpop.f32.mrb[28].mxu0 }
 0x14d   :  { %v1562_v7 = vpop.f32.mrb[28].mxu1  ;;  %v1275_v8 = vpop.f32.mrb[29].mxu0 }
 0x14e   :  { %2033 = vst [vmem:[%s3417_s3 + $0x68] sm:$0xff] %v1969_v5  ;;  %v1563_v9 = vadd.f32 %v1562_v7, %v1273_v6  ;;  %v1564_v10 = vpop.f32.mrb[29].mxu1  ;;  %v1276_v11 = vpop.f32.mrb[30].mxu0 }
 0x14f   :  { %v1565_v12 = vpop.f32.mrb[30].mxu1  ;;  %v1278_v13 = vpop.f32.mrb[31].mxu0 }
 0x150   :  { %v1775_v14 = vadd.f32 %v2769_v16, %v1563_v9  ;;  %v1566_v15 = vadd.f32 %v1565_v12, %v1276_v11  ;;  %v1567_v17 = vpop.f32.mrb[31].mxu1 }
 0x152   :  { %v1970_v18 = vmax.f32 %v1775_v14, 0.0  ;;  %v1776_v19 = vadd.f32 %v2769_v16, %v1566_v15 }
 0x154   :  { %2034 = vst [vmem:[%s3417_s3 + $0x70] sm:$0xff] %v1970_v18  ;;  %v1971_v20 = vmax.f32 %v1776_v19, 0.0  ;;  %v1281_v21 = vpop.f32.mrb[32].mxu0 }
 0x155   :  { %v1570_v22 = vpop.f32.mrb[32].mxu1  ;;  %v1283_v23 = vpop.f32.mrb[33].mxu0 }
 0x156   :  { %2035 = vst [vmem:[%s3417_s3 + $0x78] sm:$0xff] %v1971_v20  ;;  %v1571_v24 = vadd.f32 %v1570_v22, %v1281_v21  ;;  %v1572_v25 = vpop.f32.mrb[33].mxu1  ;;  %v1284_v26 = vpop.f32.mrb[34].mxu0 }
 0x157   :  { %v1573_v27 = vpop.f32.mrb[34].mxu1  ;;  %v1286_v28 = vpop.f32.mrb[35].mxu0 }
 0x158   :  { %v1777_v29 = vadd.f32 %v2769_v16, %v1571_v24  ;;  %v1574_v30 = vadd.f32 %v1573_v27, %v1284_v26  ;;  %v1575_v31 = vpop.f32.mrb[35].mxu1 }
 0x15a   :  { %v1972_v32 = vmax.f32 %v1777_v29, 0.0  ;;  %v1778_v33 = vadd.f32 %v2769_v16, %v1574_v30 }
 0x15c   :  { %2036 = vst [vmem:[%s3417_s3 + $0x80] sm:$0xff] %v1972_v32  ;;  %v1973_v34 = vmax.f32 %v1778_v33, 0.0  ;;  %v1289_v35 = vpop.f32.mrb[36].mxu0 }
 0x15d   :  { %v1578_v36 = vpop.f32.mrb[36].mxu1  ;;  %v1291_v37 = vpop.f32.mrb[37].mxu0 }
 0x15e   :  { %2037 = vst [vmem:[%s3417_s3 + $0x88] sm:$0xff] %v1973_v34  ;;  %v1579_v38 = vadd.f32 %v1578_v36, %v1289_v35  ;;  %v1580_v39 = vpop.f32.mrb[37].mxu1  ;;  %v1292_v40 = vpop.f32.mrb[38].mxu0 }
 0x15f   :  { %v1581_v41 = vpop.f32.mrb[38].mxu1  ;;  %v1294_v42 = vpop.f32.mrb[39].mxu0 }
 0x160   :  { %v1779_v43 = vadd.f32 %v2769_v16, %v1579_v38  ;;  %v1582_v44 = vadd.f32 %v1581_v41, %v1292_v40  ;;  %v1583_v45 = vpop.f32.mrb[39].mxu1 }
 0x162   :  { %v1974_v46 = vmax.f32 %v1779_v43, 0.0  ;;  %v1780_v47 = vadd.f32 %v2769_v16, %v1582_v44 }
 0x164   :  { %2038 = vst [vmem:[%s3417_s3 + $0x90] sm:$0xff] %v1974_v46  ;;  %v1975_v48 = vmax.f32 %v1780_v47, 0.0  ;;  %v1297_v49 = vpop.f32.mrb[40].mxu0 }
 0x165   :  { %v1586_v50 = vpop.f32.mrb[40].mxu1  ;;  %v1299_v51 = vpop.f32.mrb[41].mxu0 }
 0x166   :  { %2039 = vst [vmem:[%s3417_s3 + $0x98] sm:$0xff] %v1975_v48  ;;  %v1587_v52 = vadd.f32 %v1586_v50, %v1297_v49  ;;  %v1588_v53 = vpop.f32.mrb[41].mxu1  ;;  %v1300_v54 = vpop.f32.mrb[42].mxu0 }
 0x167   :  { %v1589_v55 = vpop.f32.mrb[42].mxu1  ;;  %v1302_v56 = vpop.f32.mrb[43].mxu0 }
 0x168   :  { %v1781_v57 = vadd.f32 %v2769_v16, %v1587_v52  ;;  %v1590_v58 = vadd.f32 %v1589_v55, %v1300_v54  ;;  %v1591_v59 = vpop.f32.mrb[43].mxu1 }
 0x16a   :  { %v1976_v60 = vmax.f32 %v1781_v57, 0.0  ;;  %v1782_v61 = vadd.f32 %v2769_v16, %v1590_v58 }
 0x16c   :  { %2040 = vst [vmem:[%s3417_s3 + $0xa0] sm:$0xff] %v1976_v60  ;;  %v1977_v62 = vmax.f32 %v1782_v61, 0.0  ;;  %v1305_v63 = vpop.f32.mrb[44].mxu0 }
 0x16d   :  { %v1594_v0 = vpop.f32.mrb[44].mxu1  ;;  %v1307_v1 = vpop.f32.mrb[45].mxu0 }
 0x16e   :  { %2041 = vst [vmem:[%s3417_s3 + $0xa8] sm:$0xff] %v1977_v62  ;;  %v1595_v2 = vadd.f32 %v1594_v0, %v1305_v63  ;;  %v1596_v3 = vpop.f32.mrb[45].mxu1  ;;  %v1308_v4 = vpop.f32.mrb[46].mxu0 }
 0x16f   :  { %v1597_v5 = vpop.f32.mrb[46].mxu1  ;;  %v1310_v6 = vpop.f32.mrb[47].mxu0 }
 0x170   :  { %v1783_v7 = vadd.f32 %v2769_v16, %v1595_v2  ;;  %v1598_v8 = vadd.f32 %v1597_v5, %v1308_v4  ;;  %v1599_v9 = vpop.f32.mrb[47].mxu1 }
 0x172   :  { %v1978_v10 = vmax.f32 %v1783_v7, 0.0  ;;  %v1784_v11 = vadd.f32 %v2769_v16, %v1598_v8 }
 0x174   :  { %2042 = vst [vmem:[%s3417_s3 + $0xb0] sm:$0xff] %v1978_v10  ;;  %v1979_v12 = vmax.f32 %v1784_v11, 0.0  ;;  %v1313_v13 = vpop.f32.mrb[48].mxu0 }
 0x175   :  { %v1602_v14 = vpop.f32.mrb[48].mxu1  ;;  %v1315_v15 = vpop.f32.mrb[49].mxu0 }
 0x176   :  { %2043 = vst [vmem:[%s3417_s3 + $0xb8] sm:$0xff] %v1979_v12  ;;  %v1603_v17 = vadd.f32 %v1602_v14, %v1313_v13  ;;  %v1604_v18 = vpop.f32.mrb[49].mxu1  ;;  %v1316_v19 = vpop.f32.mrb[50].mxu0 }
 0x177   :  { %v1605_v20 = vpop.f32.mrb[50].mxu1  ;;  %v1318_v21 = vpop.f32.mrb[51].mxu0 }
 0x178   :  { %v1785_v22 = vadd.f32 %v2769_v16, %v1603_v17  ;;  %v1606_v23 = vadd.f32 %v1605_v20, %v1316_v19  ;;  %v1607_v24 = vpop.f32.mrb[51].mxu1 }
 0x17a   :  { %v1980_v25 = vmax.f32 %v1785_v22, 0.0  ;;  %v1786_v26 = vadd.f32 %v2769_v16, %v1606_v23 }
 0x17c   :  { %2044 = vst [vmem:[%s3417_s3 + $0xc0] sm:$0xff] %v1980_v25  ;;  %v1981_v27 = vmax.f32 %v1786_v26, 0.0  ;;  %v1321_v28 = vpop.f32.mrb[52].mxu0 }
 0x17d   :  { %v1610_v29 = vpop.f32.mrb[52].mxu1  ;;  %v1323_v30 = vpop.f32.mrb[53].mxu0 }
 0x17e   :  { %2045 = vst [vmem:[%s3417_s3 + $0xc8] sm:$0xff] %v1981_v27  ;;  %v1611_v31 = vadd.f32 %v1610_v29, %v1321_v28  ;;  %v1612_v32 = vpop.f32.mrb[53].mxu1  ;;  %v1324_v33 = vpop.f32.mrb[54].mxu0 }
 0x17f   :  { %v1613_v34 = vpop.f32.mrb[54].mxu1  ;;  %v1326_v35 = vpop.f32.mrb[55].mxu0 }
 0x180   :  { %v1787_v36 = vadd.f32 %v2769_v16, %v1611_v31  ;;  %v1614_v37 = vadd.f32 %v1613_v34, %v1324_v33  ;;  %v1615_v38 = vpop.f32.mrb[55].mxu1 }
 0x182   :  { %v1982_v39 = vmax.f32 %v1787_v36, 0.0  ;;  %v1788_v40 = vadd.f32 %v2769_v16, %v1614_v37 }
 0x184   :  { %2046 = vst [vmem:[%s3417_s3 + $0xd0] sm:$0xff] %v1982_v39  ;;  %v1983_v41 = vmax.f32 %v1788_v40, 0.0  ;;  %v1329_v42 = vpop.f32.mrb[56].mxu0 }
 0x185   :  { %v1618_v43 = vpop.f32.mrb[56].mxu1  ;;  %v1331_v44 = vpop.f32.mrb[57].mxu0 }
 0x186   :  { %2047 = vst [vmem:[%s3417_s3 + $0xd8] sm:$0xff] %v1983_v41  ;;  %v1619_v45 = vadd.f32 %v1618_v43, %v1329_v42  ;;  %v1620_v46 = vpop.f32.mrb[57].mxu1  ;;  %v1332_v47 = vpop.f32.mrb[58].mxu0 }
 0x187   :  { %v1621_v48 = vpop.f32.mrb[58].mxu1  ;;  %v1334_v49 = vpop.f32.mrb[59].mxu0 }
 0x188   :  { %v1789_v50 = vadd.f32 %v2769_v16, %v1619_v45  ;;  %v1622_v51 = vadd.f32 %v1621_v48, %v1332_v47  ;;  %v1623_v52 = vpop.f32.mrb[59].mxu1 }
 0x18a   :  { %v1984_v53 = vmax.f32 %v1789_v50, 0.0  ;;  %v1790_v54 = vadd.f32 %v2769_v16, %v1622_v51 }
 0x18c   :  { %2048 = vst [vmem:[%s3417_s3 + $0xe0] sm:$0xff] %v1984_v53  ;;  %v1985_v55 = vmax.f32 %v1790_v54, 0.0  ;;  %v1337_v56 = vpop.f32.mrb[60].mxu0 }
 0x18d   :  { %v1626_v57 = vpop.f32.mrb[60].mxu1  ;;  %v1339_v58 = vpop.f32.mrb[61].mxu0 }
 0x18e   :  { %2049 = vst [vmem:[%s3417_s3 + $0xe8] sm:$0xff] %v1985_v55  ;;  %v1627_v59 = vadd.f32 %v1626_v57, %v1337_v56  ;;  %v1628_v60 = vpop.f32.mrb[61].mxu1  ;;  %v1340_v61 = vpop.f32.mrb[62].mxu0 }
 0x18f   :  { %v1629_v62 = vpop.f32.mrb[62].mxu1  ;;  %v1342_v63 = vpop.f32.mrb[63].mxu0 }
 0x190   :  { %v1791_v0 = vadd.f32 %v2769_v16, %v1627_v59  ;;  %v1630_v1 = vadd.f32 %v1629_v62, %v1340_v61  ;;  %v1631_v2 = vpop.f32.mrb[63].mxu1 }
 0x192   :  { %v1986_v3 = vmax.f32 %v1791_v0, 0.0  ;;  %v1792_v4 = vadd.f32 %v2769_v16, %v1630_v1  ;;  %v199_v0 = vld [vmem:[%s3417_s3 + $0x140] sm:$0xff] }
 0x194   :  { %2050 = vst [vmem:[%s3417_s3 + $0xf0] sm:$0xff] %v1986_v3  ;;  %v1987_v5 = vmax.f32 %v1792_v4, 0.0  ;;  %v1345_v6 = vpop.f32.mrb[64].mxu0 }
 0x195   :  { %v1634_v7 = vpop.f32.mrb[64].mxu1  ;;  %v1347_v8 = vpop.f32.mrb[65].mxu0 }
 0x196   :  { %2051 = vst [vmem:[%s3417_s3 + $0xf8] sm:$0xff] %v1987_v5  ;;  %v1635_v9 = vadd.f32 %v1634_v7, %v1345_v6  ;;  %v1636_v10 = vpop.f32.mrb[65].mxu1  ;;  %v1348_v11 = vpop.f32.mrb[66].mxu0 }
 0x197   :  { %v1637_v12 = vpop.f32.mrb[66].mxu1  ;;  %v1350_v13 = vpop.f32.mrb[67].mxu0 }
 0x198   :  { %v1793_v14 = vadd.f32 %v2769_v16, %v1635_v9  ;;  %v1638_v15 = vadd.f32 %v1637_v12, %v1348_v11  ;;  %v1639_v17 = vpop.f32.mrb[67].mxu1 }
 0x19a   :  { %v1988_v18 = vmax.f32 %v1793_v14, 0.0  ;;  %v1794_v19 = vadd.f32 %v2769_v16, %v1638_v15  ;;  %v201_v15 = vld [vmem:[%s3417_s3 + $0x150] sm:$0xff] }
 0x19c   :  { %2052 = vst [vmem:[%s3417_s3 + $0x100] sm:$0xff] %v1988_v18  ;;  %v1989_v20 = vmax.f32 %v1794_v19, 0.0  ;;  %v1353_v21 = vpop.f32.mrb[68].mxu0 }
 0x19d   :  { %v1642_v22 = vpop.f32.mrb[68].mxu1  ;;  %v1355_v23 = vpop.f32.mrb[69].mxu0 }
 0x19e   :  { %2053 = vst [vmem:[%s3417_s3 + $0x108] sm:$0xff] %v1989_v20  ;;  %v1643_v24 = vadd.f32 %v1642_v22, %v1353_v21  ;;  %v1644_v25 = vpop.f32.mrb[69].mxu1  ;;  %v1356_v26 = vpop.f32.mrb[70].mxu0  ;;  %v202_v22 = vld [vmem:[%s3417_s3 + $0x158] sm:$0xff] }
 0x19f   :  { %v1645_v27 = vpop.f32.mrb[70].mxu1  ;;  %v1358_v28 = vpop.f32.mrb[71].mxu0 }
 0x1a0   :  { %v1795_v29 = vadd.f32 %v2769_v16, %v1643_v24  ;;  %v1646_v30 = vadd.f32 %v1645_v27, %v1356_v26  ;;  %v1647_v31 = vpop.f32.mrb[71].mxu1 }
 0x1a2   :  { %v1990_v32 = vmax.f32 %v1795_v29, 0.0  ;;  %v1796_v33 = vadd.f32 %v2769_v16, %v1646_v30 }
 0x1a4   :  { %2054 = vst [vmem:[%s3417_s3 + $0x110] sm:$0xff] %v1990_v32  ;;  %v1991_v34 = vmax.f32 %v1796_v33, 0.0  ;;  %v1361_v35 = vpop.f32.mrb[72].mxu0  ;;  %v203_v32 = vld [vmem:[%s3417_s3 + $0x160] sm:$0xff] }
 0x1a5   :  { %v1650_v36 = vpop.f32.mrb[72].mxu1  ;;  %v1363_v37 = vpop.f32.mrb[73].mxu0 }
 0x1a6   :  { %2055 = vst [vmem:[%s3417_s3 + $0x118] sm:$0xff] %v1991_v34  ;;  %v1651_v38 = vadd.f32 %v1650_v36, %v1361_v35  ;;  %v1652_v39 = vpop.f32.mrb[73].mxu1  ;;  %v1364_v40 = vpop.f32.mrb[74].mxu0 }
 0x1a7   :  { %v1653_v41 = vpop.f32.mrb[74].mxu1  ;;  %v1366_v42 = vpop.f32.mrb[75].mxu0 }
 0x1a8   :  { %v1797_v43 = vadd.f32 %v2769_v16, %v1651_v38  ;;  %v1654_v44 = vadd.f32 %v1653_v41, %v1364_v40  ;;  %v1655_v45 = vpop.f32.mrb[75].mxu1  ;;  %v204_v38 = vld [vmem:[%s3417_s3 + $0x168] sm:$0xff] }
 0x1aa   :  { %v1992_v46 = vmax.f32 %v1797_v43, 0.0  ;;  %v1798_v47 = vadd.f32 %v2769_v16, %v1654_v44 }
 0x1ac   :  { %2056 = vst [vmem:[%s3417_s3 + $0x120] sm:$0xff] %v1992_v46  ;;  %v1993_v48 = vmax.f32 %v1798_v47, 0.0  ;;  %v1369_v49 = vpop.f32.mrb[76].mxu0 }
 0x1ad   :  { %v1658_v50 = vpop.f32.mrb[76].mxu1  ;;  %v1371_v51 = vpop.f32.mrb[77].mxu0 }
 0x1ae   :  { %2057 = vst [vmem:[%s3417_s3 + $0x128] sm:$0xff] %v1993_v48  ;;  %v1659_v52 = vadd.f32 %v1658_v50, %v1369_v49  ;;  %v1660_v53 = vpop.f32.mrb[77].mxu1  ;;  %v1372_v54 = vpop.f32.mrb[78].mxu0  ;;  %v205_v48 = vld [vmem:[%s3417_s3 + $0x170] sm:$0xff] }
 0x1af   :  { %v1661_v55 = vpop.f32.mrb[78].mxu1  ;;  %v1374_v56 = vpop.f32.mrb[79].mxu0 }
 0x1b0   :  { %v1799_v57 = vadd.f32 %v2769_v16, %v1659_v52  ;;  %v1662_v58 = vadd.f32 %v1661_v55, %v1372_v54  ;;  %v1663_v59 = vpop.f32.mrb[79].mxu1  ;;  %v206_v54 = vld [vmem:[%s3417_s3 + $0x178] sm:$0xff] }
 0x1b2   :  { %v1994_v60 = vmax.f32 %v1799_v57, 0.0  ;;  %v1800_v61 = vadd.f32 %v2769_v16, %v1662_v58  ;;  %v200_v16 = vld [vmem:[%s3417_s3 + $0x148] sm:$0xff] }
 0x1b4   :  { %2058 = vst [vmem:[%s3417_s3 + $0x130] sm:$0xff] %v1994_v60  ;;  %v1995_v62 = vmax.f32 %v1800_v61, 0.0  ;;  %v1377_v63 = vpop.f32.mrb[80].mxu0 }
 0x1b5   :  { %v1666_v1 = vpop.f32.mrb[80].mxu1  ;;  %v1379_v2 = vpop.f32.mrb[81].mxu0 }
 0x1b6   :  { %2059 = vst [vmem:[%s3417_s3 + $0x138] sm:$0xff] %v1995_v62  ;;  %v1667_v3 = vadd.f32 %v1666_v1, %v1377_v63  ;;  %v1668_v4 = vpop.f32.mrb[81].mxu1  ;;  %v1380_v5 = vpop.f32.mrb[82].mxu0 }
 0x1b7   :  { %v1669_v6 = vpop.f32.mrb[82].mxu1  ;;  %v1382_v7 = vpop.f32.mrb[83].mxu0 }
 0x1b8   :  { %v1801_v8 = vadd.f32 %v1667_v3, %v199_v0  ;;  %v1670_v9 = vadd.f32 %v1669_v6, %v1380_v5  ;;  %v1671_v10 = vpop.f32.mrb[83].mxu1  ;;  %v207_v0 = vld [vmem:[%s3417_s3 + $0x180] sm:$0xff] }
 0x1ba   :  { %v1996_v11 = vmax.f32 %v1801_v8, 0.0  ;;  %v1802_v12 = vadd.f32 %v1670_v9, %v200_v16  ;;  %v208_v16 = vld [vmem:[%s3417_s3 + $0x188] sm:$0xff] }
 0x1bc   :  { %2060 = vst [vmem:[%s3417_s3 + $0x140] sm:$0xff] %v1996_v11  ;;  %v1997_v13 = vmax.f32 %v1802_v12, 0.0  ;;  %v1385_v14 = vpop.f32.mrb[84].mxu0 }
 0x1bd   :  { %v1674_v17 = vpop.f32.mrb[84].mxu1  ;;  %v1387_v18 = vpop.f32.mrb[85].mxu0 }
 0x1be   :  { %2061 = vst [vmem:[%s3417_s3 + $0x148] sm:$0xff] %v1997_v13  ;;  %v1675_v19 = vadd.f32 %v1674_v17, %v1385_v14  ;;  %v1676_v20 = vpop.f32.mrb[85].mxu1  ;;  %v1388_v21 = vpop.f32.mrb[86].mxu0 }
 0x1bf   :  { %v1677_v23 = vpop.f32.mrb[86].mxu1  ;;  %v1390_v24 = vpop.f32.mrb[87].mxu0 }
 0x1c0   :  { %v1803_v25 = vadd.f32 %v1675_v19, %v201_v15  ;;  %v1678_v26 = vadd.f32 %v1677_v23, %v1388_v21  ;;  %v1679_v27 = vpop.f32.mrb[87].mxu1  ;;  %v209_v15 = vld [vmem:[%s3417_s3 + $0x190] sm:$0xff] }
 0x1c2   :  { %v1998_v28 = vmax.f32 %v1803_v25, 0.0  ;;  %v1804_v29 = vadd.f32 %v1678_v26, %v202_v22  ;;  %v210_v22 = vld [vmem:[%s3417_s3 + $0x198] sm:$0xff] }
 0x1c4   :  { %2062 = vst [vmem:[%s3417_s3 + $0x150] sm:$0xff] %v1998_v28  ;;  %v1999_v30 = vmax.f32 %v1804_v29, 0.0  ;;  %v1393_v31 = vpop.f32.mrb[88].mxu0 }
 0x1c5   :  { %v1682_v33 = vpop.f32.mrb[88].mxu1  ;;  %v1395_v34 = vpop.f32.mrb[89].mxu0 }
 0x1c6   :  { %2063 = vst [vmem:[%s3417_s3 + $0x158] sm:$0xff] %v1999_v30  ;;  %v1683_v35 = vadd.f32 %v1682_v33, %v1393_v31  ;;  %v1684_v36 = vpop.f32.mrb[89].mxu1  ;;  %v1396_v37 = vpop.f32.mrb[90].mxu0 }
 0x1c7   :  { %v1685_v39 = vpop.f32.mrb[90].mxu1  ;;  %v1398_v40 = vpop.f32.mrb[91].mxu0 }
 0x1c8   :  { %v1805_v41 = vadd.f32 %v1683_v35, %v203_v32  ;;  %v1686_v42 = vadd.f32 %v1685_v39, %v1396_v37  ;;  %v1687_v43 = vpop.f32.mrb[91].mxu1  ;;  %v211_v32 = vld [vmem:[%s3417_s3 + $0x1a0] sm:$0xff] }
 0x1ca   :  { %v2000_v44 = vmax.f32 %v1805_v41, 0.0  ;;  %v1806_v45 = vadd.f32 %v1686_v42, %v204_v38  ;;  %v212_v38 = vld [vmem:[%s3417_s3 + $0x1a8] sm:$0xff] }
 0x1cc   :  { %2064 = vst [vmem:[%s3417_s3 + $0x160] sm:$0xff] %v2000_v44  ;;  %v2001_v46 = vmax.f32 %v1806_v45, 0.0  ;;  %v1401_v47 = vpop.f32.mrb[92].mxu0 }
 0x1cd   :  { %v1690_v49 = vpop.f32.mrb[92].mxu1  ;;  %v1403_v50 = vpop.f32.mrb[93].mxu0 }
 0x1ce   :  { %2065 = vst [vmem:[%s3417_s3 + $0x168] sm:$0xff] %v2001_v46  ;;  %v1691_v51 = vadd.f32 %v1690_v49, %v1401_v47  ;;  %v1692_v52 = vpop.f32.mrb[93].mxu1  ;;  %v1404_v53 = vpop.f32.mrb[94].mxu0 }
 0x1cf   :  { %v1693_v55 = vpop.f32.mrb[94].mxu1  ;;  %v1406_v56 = vpop.f32.mrb[95].mxu0 }
 0x1d0   :  { %v1807_v57 = vadd.f32 %v1691_v51, %v205_v48  ;;  %v1694_v58 = vadd.f32 %v1693_v55, %v1404_v53  ;;  %v1695_v59 = vpop.f32.mrb[95].mxu1  ;;  %v213_v48 = vld [vmem:[%s3417_s3 + $0x1b0] sm:$0xff] }
 0x1d2   :  { %v2002_v60 = vmax.f32 %v1807_v57, 0.0  ;;  %v1808_v61 = vadd.f32 %v1694_v58, %v206_v54  ;;  %v214_v54 = vld [vmem:[%s3417_s3 + $0x1b8] sm:$0xff] }
 0x1d4   :  { %2066 = vst [vmem:[%s3417_s3 + $0x170] sm:$0xff] %v2002_v60  ;;  %v2003_v62 = vmax.f32 %v1808_v61, 0.0  ;;  %v1409_v63 = vpop.f32.mrb[96].mxu0 }
 0x1d5   :  { %v1698_v1 = vpop.f32.mrb[96].mxu1  ;;  %v1411_v2 = vpop.f32.mrb[97].mxu0 }
 0x1d6   :  { %2067 = vst [vmem:[%s3417_s3 + $0x178] sm:$0xff] %v2003_v62  ;;  %v1699_v3 = vadd.f32 %v1698_v1, %v1409_v63  ;;  %v1700_v4 = vpop.f32.mrb[97].mxu1  ;;  %v1412_v5 = vpop.f32.mrb[98].mxu0 }
 0x1d7   :  { %v1701_v6 = vpop.f32.mrb[98].mxu1  ;;  %v1414_v7 = vpop.f32.mrb[99].mxu0 }
 0x1d8   :  { %v1809_v8 = vadd.f32 %v1699_v3, %v207_v0  ;;  %v1702_v9 = vadd.f32 %v1701_v6, %v1412_v5  ;;  %v1703_v10 = vpop.f32.mrb[99].mxu1  ;;  %v215_v0 = vld [vmem:[%s3417_s3 + $0x1c0] sm:$0xff] }
 0x1da   :  { %v2004_v11 = vmax.f32 %v1809_v8, 0.0  ;;  %v1810_v12 = vadd.f32 %v1702_v9, %v208_v16  ;;  %v216_v16 = vld [vmem:[%s3417_s3 + $0x1c8] sm:$0xff] }
 0x1dc   :  { %2068 = vst [vmem:[%s3417_s3 + $0x180] sm:$0xff] %v2004_v11  ;;  %v2005_v13 = vmax.f32 %v1810_v12, 0.0  ;;  %v1417_v14 = vpop.f32.mrb[100].mxu0 }
 0x1dd   :  { %v1706_v17 = vpop.f32.mrb[100].mxu1  ;;  %v1419_v18 = vpop.f32.mrb[101].mxu0 }
 0x1de   :  { %2069 = vst [vmem:[%s3417_s3 + $0x188] sm:$0xff] %v2005_v13  ;;  %v1707_v19 = vadd.f32 %v1706_v17, %v1417_v14  ;;  %v1708_v20 = vpop.f32.mrb[101].mxu1  ;;  %v1420_v21 = vpop.f32.mrb[102].mxu0 }
 0x1df   :  { %v1709_v23 = vpop.f32.mrb[102].mxu1  ;;  %v1422_v24 = vpop.f32.mrb[103].mxu0 }
 0x1e0   :  { %v1811_v25 = vadd.f32 %v1707_v19, %v209_v15  ;;  %v1710_v26 = vadd.f32 %v1709_v23, %v1420_v21  ;;  %v1711_v27 = vpop.f32.mrb[103].mxu1  ;;  %v217_v15 = vld [vmem:[%s3417_s3 + $0x1d0] sm:$0xff] }
 0x1e2   :  { %v2006_v28 = vmax.f32 %v1811_v25, 0.0  ;;  %v1812_v29 = vadd.f32 %v1710_v26, %v210_v22  ;;  %v218_v22 = vld [vmem:[%s3417_s3 + $0x1d8] sm:$0xff] }
 0x1e4   :  { %2070 = vst [vmem:[%s3417_s3 + $0x190] sm:$0xff] %v2006_v28  ;;  %v2007_v30 = vmax.f32 %v1812_v29, 0.0  ;;  %v1425_v31 = vpop.f32.mrb[104].mxu0 }
 0x1e5   :  { %v1714_v33 = vpop.f32.mrb[104].mxu1  ;;  %v1427_v34 = vpop.f32.mrb[105].mxu0 }
 0x1e6   :  { %2071 = vst [vmem:[%s3417_s3 + $0x198] sm:$0xff] %v2007_v30  ;;  %v1715_v35 = vadd.f32 %v1714_v33, %v1425_v31  ;;  %v1716_v36 = vpop.f32.mrb[105].mxu1  ;;  %v1428_v37 = vpop.f32.mrb[106].mxu0 }
 0x1e7   :  { %v1717_v39 = vpop.f32.mrb[106].mxu1  ;;  %v1430_v40 = vpop.f32.mrb[107].mxu0 }
 0x1e8   :  { %v1813_v41 = vadd.f32 %v1715_v35, %v211_v32  ;;  %v1718_v42 = vadd.f32 %v1717_v39, %v1428_v37  ;;  %v1719_v43 = vpop.f32.mrb[107].mxu1  ;;  %v219_v32 = vld [vmem:[%s3417_s3 + $0x1e0] sm:$0xff] }
 0x1ea   :  { %v2008_v44 = vmax.f32 %v1813_v41, 0.0  ;;  %v1814_v45 = vadd.f32 %v1718_v42, %v212_v38  ;;  %v220_v38 = vld [vmem:[%s3417_s3 + $0x1e8] sm:$0xff] }
 0x1ec   :  { %2072 = vst [vmem:[%s3417_s3 + $0x1a0] sm:$0xff] %v2008_v44  ;;  %v2009_v46 = vmax.f32 %v1814_v45, 0.0  ;;  %v1433_v47 = vpop.f32.mrb[108].mxu0 }
 0x1ed   :  { %v1722_v49 = vpop.f32.mrb[108].mxu1  ;;  %v1435_v50 = vpop.f32.mrb[109].mxu0 }
 0x1ee   :  { %2073 = vst [vmem:[%s3417_s3 + $0x1a8] sm:$0xff] %v2009_v46  ;;  %v1723_v51 = vadd.f32 %v1722_v49, %v1433_v47  ;;  %v1724_v52 = vpop.f32.mrb[109].mxu1  ;;  %v1436_v53 = vpop.f32.mrb[110].mxu0 }
 0x1ef   :  { %v1725_v55 = vpop.f32.mrb[110].mxu1  ;;  %v1438_v56 = vpop.f32.mrb[111].mxu0 }
 0x1f0   :  { %v1815_v57 = vadd.f32 %v1723_v51, %v213_v48  ;;  %v1726_v58 = vadd.f32 %v1725_v55, %v1436_v53  ;;  %v1727_v59 = vpop.f32.mrb[111].mxu1  ;;  %v221_v48 = vld [vmem:[%s3417_s3 + $0x1f0] sm:$0xff] }
 0x1f2   :  { %v2010_v60 = vmax.f32 %v1815_v57, 0.0  ;;  %v1816_v61 = vadd.f32 %v1726_v58, %v214_v54  ;;  %v222_v54 = vld [vmem:[%s3417_s3 + $0x1f8] sm:$0xff] }
 0x1f4   :  { %2074 = vst [vmem:[%s3417_s3 + $0x1b0] sm:$0xff] %v2010_v60  ;;  %v2011_v62 = vmax.f32 %v1816_v61, 0.0  ;;  %v1441_v63 = vpop.f32.mrb[112].mxu0 }
 0x1f5   :  { %v1730_v1 = vpop.f32.mrb[112].mxu1  ;;  %v1443_v2 = vpop.f32.mrb[113].mxu0 }
 0x1f6   :  { %2075 = vst [vmem:[%s3417_s3 + $0x1b8] sm:$0xff] %v2011_v62  ;;  %v1731_v3 = vadd.f32 %v1730_v1, %v1441_v63  ;;  %v1732_v4 = vpop.f32.mrb[113].mxu1  ;;  %v1444_v5 = vpop.f32.mrb[114].mxu0 }
 0x1f7   :  { %v1733_v6 = vpop.f32.mrb[114].mxu1  ;;  %v1446_v7 = vpop.f32.mrb[115].mxu0 }
 0x1f8   :  { %v1817_v8 = vadd.f32 %v1731_v3, %v215_v0  ;;  %v1734_v9 = vadd.f32 %v1733_v6, %v1444_v5  ;;  %v1735_v10 = vpop.f32.mrb[115].mxu1 }
 0x1fa   :  { %v2012_v11 = vmax.f32 %v1817_v8, 0.0  ;;  %v1818_v12 = vadd.f32 %v1734_v9, %v216_v16 }
 0x1fc   :  { %2076 = vst [vmem:[%s3417_s3 + $0x1c0] sm:$0xff] %v2012_v11  ;;  %v2013_v13 = vmax.f32 %v1818_v12, 0.0  ;;  %v1449_v14 = vpop.f32.mrb[116].mxu0 }
 0x1fd   :  { %v1738_v17 = vpop.f32.mrb[116].mxu1  ;;  %v1451_v18 = vpop.f32.mrb[117].mxu0 }
 0x1fe   :  { %2077 = vst [vmem:[%s3417_s3 + $0x1c8] sm:$0xff] %v2013_v13  ;;  %v1739_v19 = vadd.f32 %v1738_v17, %v1449_v14  ;;  %v1740_v20 = vpop.f32.mrb[117].mxu1  ;;  %v1452_v21 = vpop.f32.mrb[118].mxu0 }
 0x1ff   :  { %v1741_v23 = vpop.f32.mrb[118].mxu1  ;;  %v1454_v24 = vpop.f32.mrb[119].mxu0 }
 0x200   :  { %v1819_v25 = vadd.f32 %v1739_v19, %v217_v15  ;;  %v1742_v26 = vadd.f32 %v1741_v23, %v1452_v21  ;;  %v1743_v27 = vpop.f32.mrb[119].mxu1 }
 0x202   :  { %v2014_v28 = vmax.f32 %v1819_v25, 0.0  ;;  %v1820_v29 = vadd.f32 %v1742_v26, %v218_v22 }
 0x204   :  { %2078 = vst [vmem:[%s3417_s3 + $0x1d0] sm:$0xff] %v2014_v28  ;;  %v2015_v30 = vmax.f32 %v1820_v29, 0.0  ;;  %v1457_v31 = vpop.f32.mrb[120].mxu0 }
 0x205   :  { %v1746_v33 = vpop.f32.mrb[120].mxu1  ;;  %v1459_v34 = vpop.f32.mrb[121].mxu0 }
 0x206   :  { %2079 = vst [vmem:[%s3417_s3 + $0x1d8] sm:$0xff] %v2015_v30  ;;  %v1747_v35 = vadd.f32 %v1746_v33, %v1457_v31  ;;  %v1748_v36 = vpop.f32.mrb[121].mxu1  ;;  %v1460_v37 = vpop.f32.mrb[122].mxu0 }
 0x207   :  { %v1749_v39 = vpop.f32.mrb[122].mxu1  ;;  %v1462_v40 = vpop.f32.mrb[123].mxu0 }
 0x208   :  { %v1821_v41 = vadd.f32 %v1747_v35, %v219_v32  ;;  %v1750_v42 = vadd.f32 %v1749_v39, %v1460_v37  ;;  %v1751_v43 = vpop.f32.mrb[123].mxu1 }
 0x20a   :  { %v2016_v44 = vmax.f32 %v1821_v41, 0.0  ;;  %v1822_v45 = vadd.f32 %v1750_v42, %v220_v38 }
 0x20c   :  { %2080 = vst [vmem:[%s3417_s3 + $0x1e0] sm:$0xff] %v2016_v44  ;;  %v2017_v46 = vmax.f32 %v1822_v45, 0.0  ;;  %v1465_v47 = vpop.f32.mrb[124].mxu0 }
 0x20d   :  { %v1754_v49 = vpop.f32.mrb[124].mxu1  ;;  %v1467_v50 = vpop.f32.mrb[125].mxu0 }
 0x20e   :  { %2081 = vst [vmem:[%s3417_s3 + $0x1e8] sm:$0xff] %v2017_v46  ;;  %v1755_v51 = vadd.f32 %v1754_v49, %v1465_v47  ;;  %v1756_v52 = vpop.f32.mrb[125].mxu1  ;;  %v1468_v53 = vpop.f32.mrb[126].mxu0 }
 0x20f   :  { %v1757_v55 = vpop.f32.mrb[126].mxu1  ;;  %v1470_v56 = vpop.f32.mrb[127].mxu0 }
 0x210   :  { %v1823_v57 = vadd.f32 %v1755_v51, %v221_v48  ;;  %v1758_v58 = vadd.f32 %v1757_v55, %v1468_v53  ;;  %v1759_v59 = vpop.f32.mrb[127].mxu1 }
 0x212   :  { %v2018_v60 = vmax.f32 %v1823_v57, 0.0  ;;  %v1824_v61 = vadd.f32 %v1758_v58, %v222_v54 }
 0x214   :  { %2082 = vst [vmem:[%s3417_s3 + $0x1f0] sm:$0xff] %v2018_v60  ;;  %v2019_v62 = vmax.f32 %v1824_v61, 0.0 }
 0x216   :  { %2083 = vst [vmem:[%s3417_s3 + $0x1f8] sm:$0xff] %v2019_v62 }

</bundles_post_ra>
